<compile_context>
chip_gen: v7x
topology: tpu7x:2x2x1
jax: 0.10.0
libtpu: 0.0.40
codegen_flags: <defaults>
</compile_context>

<pallas_src>
import functools
import math

import jax
import jax.numpy as jnp
from jax import lax
from jax.experimental import pallas as pl
from jax.experimental.pallas import tpu as pltpu

_LANE = 128
_NEG_PAD = -1e30   # encoder_b2 value for padded hidden columns (never top-k)


def _round_up(v, m):
    return -(-v // m) * m


def _gelu_exact(x):
    # nn.GELU() default (approximate='none'): exact erf-based GELU.
    # TODO(synk): tanh-GELU would route through the EUP slot (cheaper when
    # VALU-bound), but the PyTorch module uses the exact variant.
    return 0.5 * x * (1.0 + lax.erf(x * (1.0 / math.sqrt(2.0))))


def _topk_threshold(s, k):
    """k-th largest value per row of s: (Tt, N) -> (Tt, 1).

    Threshold-only iteration (no mutated copy of s is carried):
        thr_{t+1} = max over {s : s < thr_t}
    Note: this peels distinct VALUES, so duplicated values inside a row's
    top-k admit more than k features (measure-zero with continuous scores).
    TODO(synk): chunk the row-max over N lane-slabs (vreg live range) and/or
    use a count-based binary search when k is large / N is grid-tiled.
    """
    neg = jnp.finfo(s.dtype).min

    def body(_, thr):
        return jnp.max(jnp.where(s < thr, s, neg), axis=-1, keepdims=True)

    thr0 = jnp.full((s.shape[0], 1), jnp.inf, dtype=s.dtype)
    return lax.fori_loop(0, k, body, thr0, unroll=True)


def _sae_kernel(x_ref, b2_ref, w1_ref, eb1_ref, w2_ref, eb2_ref,
                w3_ref, db1_ref, w4_ref, out_ref, feat_ref, *, k):
    cd = w1_ref.dtype                     # MXU operand dtype (bf16 or f32)
    b2 = b2_ref[...]                      # (Tt, Cp) pre-replicated decoder_b2

    # x = x - decoder_b2
    x = x_ref[...] - b2                                                  # (Tt, Cp)

    # einsum 'blc,dc->bld' + b1, GELU   (w1 pre-transposed to (Cp, Dp))
    h1 = _gelu_exact(jnp.dot(x.astype(cd), w1_ref[...],
                             preferred_element_type=jnp.float32)
                     + eb1_ref[...])                                     # (Tt, Dp)

    # einsum 'bld,nd->bln' + b2         (w2 pre-transposed to (Dp, Np));
    # padded N columns carry a -1e30 bias so they never enter the top-k.
    s = jnp.dot(h1.astype(cd), w2_ref[...],
                preferred_element_type=jnp.float32) + eb2_ref[...]       # (Tt, Np)

    # top-k threshold along the feature axis.
    thr = _topk_threshold(s, k)
    mask = s >= thr                                                      # (Tt, Np)

    # Per-tile feature-activation partial (summed over tiles outside the
    # kernel so the token grid axis stays "parallel").
    feat_ref[...] = jnp.sum(mask.astype(jnp.float32), axis=0,
                            keepdims=True)[None]                         # (1,1,Np)

    # Fused mask + ReLU: relu(s * mask) == where(s >= max(thr, 0), s, 0).
    z = jnp.where(s >= jnp.maximum(thr, 0.0), s, 0.0)                    # (Tt, Np)

    # einsum 'bln,dn->bld' + b1, GELU   (w3 pre-transposed to (Np, Dp))
    h2 = _gelu_exact(jnp.dot(z.astype(cd), w3_ref[...],
                             preferred_element_type=jnp.float32)
                     + db1_ref[...])                                     # (Tt, Dp)

    # einsum 'bld,cd->blc' + decoder_b2 (w4 pre-transposed to (Dp, Cp))
    y = jnp.dot(h2.astype(cd), w4_ref[...],
                preferred_element_type=jnp.float32) + b2
    out_ref[...] = y.astype(out_ref.dtype)                               # (Tt, Cp)


def _pick_token_tile(T, L, target):
    # Largest divisor of T that is <= target and a multiple of L (so the bias
    # replication lines up); prefer multiples of 128 (MXU M dim), then 8.
    cands = [c for c in range(1, min(T, target) + 1)
             if T % c == 0 and c % L == 0]
    if not cands:
        return T
    for pref in (_LANE, 8, 1):
        good = [c for c in cands if c % pref == 0]
        if good:
            return max(good)
    return max(cands)


def _pad2(a, rows, cols, fill=0.0):
    r, c = a.shape
    if r == rows and c == cols:
        return a
    return jnp.pad(a, ((0, rows - r), (0, cols - c)), constant_values=fill)


def topk_mlp_sae_forward(x, params, k, *, token_tile=None,
                         matmul_dtype=jnp.bfloat16):
    """x: (B, L, C) float32. Returns (recon (B, L, C), feature_act (hidden,)).

    matmul_dtype casts MXU operands only (f32 accumulate; biases, scores and
    the top-k compare stay f32).  Use jnp.float32 for exact top-k parity with
    an f32 reference near ties.
    """
    B, L, C = x.shape
    T = B * L
    D = params["encoder_w1"].shape[0]
    N = params["encoder_w2"].shape[0]

    # Lane-dense padding (one-time, wrapper side).
    Cp, Dp, Np = (_round_up(v, _LANE) for v in (C, D, N))

    # Per-generation VMEM allowance.
    try:
        info = pltpu.get_tpu_info()
        vmem_cap = int(getattr(info, "vmem_capacity_bytes", 64 * 2**20))
    except Exception:
        vmem_cap = 64 * 2**20
    allowed = int(vmem_cap * 0.84)      # ~107 MiB on v5e/v6e, ~54 MiB on v7x

    if token_tile is None:
        target = 512 if allowed >= 80 * 2**20 else 256
        token_tile = _pick_token_tile(T, L, target)
    assert T % token_tile == 0 and token_tile % L == 0
    num_tiles = T // token_tile
    reps = token_tile // L

    # One-time transposes / casts / pads so every in-kernel matmul is a plain
    # [M,K]@[K,N] contraction with 128-multiple K/N dims.
    w1 = _pad2(params["encoder_w1"].T.astype(matmul_dtype), Cp, Dp)
    w2 = _pad2(params["encoder_w2"].T.astype(matmul_dtype), Dp, Np)
    w3 = _pad2(params["decoder_w1"].T.astype(matmul_dtype), Np, Dp)
    w4 = _pad2(params["decoder_w2"].T.astype(matmul_dtype), Dp, Cp)
    eb1 = _pad2(params["encoder_b1"][None].astype(jnp.float32), 1, Dp)
    db1 = _pad2(params["decoder_b1"][None].astype(jnp.float32), 1, Dp)
    eb2 = _pad2(params["encoder_b2"][None].astype(jnp.float32), 1, Np,
                fill=_NEG_PAD)
    # decoder_b2 replicated once per (L-aligned) token tile in the wrapper —
    # identical for every grid step, kept VMEM-resident single-buffered.
    b2t = jnp.tile(
        _pad2(params["decoder_b2"].reshape(L, C).astype(jnp.float32), L, Cp),
        (reps, 1))                                                # (Tt, Cp)

    x_flat = _pad2(x.reshape(T, C).astype(jnp.float32), T, Cp)    # (T, Cp)

    itemsize = jnp.dtype(matmul_dtype).itemsize

    def vmem_budget(weight_bufs):
        resident = weight_bufs * (
            itemsize * (Cp * Dp + Dp * Np + Np * Dp + Dp * Cp)    # w1..w4
            + 4 * (2 * Dp + Np)                                   # biases
            + 4 * token_tile * Cp)                                # b2 tile
        io = 2 * 4 * token_tile * Cp * 2 + 2 * 4 * Np             # x / recon / feat
        inter = (4 * token_tile * (2 * Dp + 2 * Np)               # h1,h2,s,z f32
                 + itemsize * token_tile * (Cp + 2 * Dp + Np))    # operand casts
        return resident + io + inter

    tok_spec = pl.BlockSpec((token_tile, Cp), lambda i: (i, 0))

    def build(single_buffer_resident):
        res_mode = pl.Buffered(1) if single_buffer_resident else None

        def full(shape):
            if res_mode is None:
                return pl.BlockSpec(shape, lambda i: (0,) * len(shape))
            return pl.BlockSpec(shape, lambda i: (0,) * len(shape),
                                pipeline_mode=res_mode)

        budget = vmem_budget(1 if single_buffer_resident else 2)
        vmem_limit = int(min(max(budget * 5 // 4, 16 * 2**20), allowed))

        return pl.pallas_call(
            functools.partial(_sae_kernel, k=k),
            out_shape=(
                jax.ShapeDtypeStruct((T, Cp), jnp.float32),
                jax.ShapeDtypeStruct((num_tiles, 1, Np), jnp.float32),
            ),
            grid_spec=pltpu.PrefetchScalarGridSpec(
                num_scalar_prefetch=0,
                grid=(num_tiles,),
                in_specs=[
                    tok_spec,                      # x tile (double-buffered)
                    full((token_tile, Cp)),        # decoder_b2 tile (resident)
                    full((Cp, Dp)),                # encoder_w1^T
                    full((1, Dp)),                 # encoder_b1
                    full((Dp, Np)),                # encoder_w2^T
                    full((1, Np)),                 # encoder_b2 (+ pad mask)
                    full((Np, Dp)),                # decoder_w1^T
                    full((1, Dp)),                 # decoder_b1
                    full((Dp, Cp)),                # decoder_w2^T
                ],
                out_specs=[
                    tok_spec,                                       # recon
                    pl.BlockSpec((1, 1, Np), lambda i: (i, 0, 0)),  # feat partials
                ],
            ),
            compiler_params=pltpu.CompilerParams(
                dimension_semantics=("parallel",),   # no cross-tile accumulation
                vmem_limit_bytes=vmem_limit),
        )

    args = (x_flat, b2t, w1, eb1, w2, eb2, w3, db1, w4)
    try:
        recon_flat, feat_part = build(True)(*args)
    except Exception:
        # pl.Buffered(1) not supported on this JAX build; fall back to the
        # default double-buffered resident weights.
        recon_flat, feat_part = build(False)(*args)

    feat = feat_part.reshape(num_tiles, Np).sum(axis=0)[:N]
    recon = recon_flat[:, :C].reshape(B, L, C)
    return recon, feat


def _kaiming_uniform(key, shape, fan_in):
    bound = math.sqrt(6.0 / fan_in)
    return jax.random.uniform(key, shape, jnp.float32, -bound, bound)


def make_params(key, dim, dense_hidden, hidden, num_layers):
    L = num_layers * 2
    ks = jax.random.split(key, 5)
    return {
        "encoder_w1": _kaiming_uniform(ks[0], (dense_hidden, dim), dim),
        "encoder_b1": jnp.zeros((dense_hidden,), jnp.float32),
        "encoder_w2": _kaiming_uniform(ks[1], (hidden, dense_hidden), dense_hidden),
        "encoder_b2": jnp.zeros((hidden,), jnp.float32),
        "decoder_w1": _kaiming_uniform(ks[2], (dense_hidden, hidden), hidden),
        "decoder_b1": jnp.zeros((dense_hidden,), jnp.float32),
        "decoder_w2": _kaiming_uniform(ks[3], (dim, dense_hidden), dense_hidden),
        "decoder_b2": _kaiming_uniform(ks[4], (1, L, dim), L * dim),
    }


def reference_forward(x, p, k):
    x0 = x - p["decoder_b2"]
    h1 = jax.nn.gelu(
        jnp.einsum("blc,dc->bld", x0, p["encoder_w1"], precision="highest")
        + p["encoder_b1"], approximate=False)
    s = jnp.einsum("bld,nd->bln", h1, p["encoder_w2"], precision="highest") \
        + p["encoder_b2"]
    vals, _ = lax.top_k(s, k)
    thr = vals[..., k - 1:k]
    mask = s >= thr
    z = jnp.maximum(jnp.where(mask, s, 0.0), 0.0)
    feat = jnp.sum(mask.reshape(-1, s.shape[-1]).astype(jnp.float32), axis=0)
    h2 = jax.nn.gelu(
        jnp.einsum("bln,dn->bld", z, p["decoder_w1"], precision="highest")
        + p["decoder_b1"], approximate=False)
    y = jnp.einsum("bld,cd->blc", h2, p["decoder_w2"], precision="highest") \
        + p["decoder_b2"]
    return y, feat


if __name__ == "__main__":
    dim = 32
    dense_hidden = 64
    hidden = 128
    num_layers = 4            # L = num_layers * 2 = 8
    k = 16
    B = 2

    key = jax.random.PRNGKey(0)
    pkey, xkey = jax.random.split(key)
    params = make_params(pkey, dim, dense_hidden, hidden, num_layers)
    L = num_layers * 2
    x = jax.random.normal(xkey, (B, L, dim), jnp.float32)

    # Strict parity run: f32 MXU operands so the top-k mask matches the f32
    # reference exactly (no near-tie perturbation).
    recon, feat = topk_mlp_sae_forward(x, params, k, matmul_dtype=jnp.float32)
    recon = jax.block_until_ready(recon)
    feat = jax.block_until_ready(feat)

    recon_ref, feat_ref = reference_forward(x, params, k)

    assert recon.shape == (B, L, dim)
    assert feat.shape == (hidden,)
    assert bool(jnp.all(jnp.isfinite(recon)))
    assert bool(jnp.allclose(recon, recon_ref, rtol=2e-2, atol=2e-2))
    assert bool(jnp.allclose(feat, feat_ref, rtol=1e-3, atol=1e-3))

    # Production-default path: bf16 MXU operands (f32 accumulate).  Sanity
    # check only — near-threshold top-k flips are possible vs. the f32 ref.
    recon_b, feat_b = topk_mlp_sae_forward(x, params, k)   # bf16 default
    recon_b = jax.block_until_ready(recon_b)
    feat_b = jax.block_until_ready(feat_b)
    assert recon_b.shape == (B, L, dim)
    assert feat_b.shape == (hidden,)
    assert bool(jnp.all(jnp.isfinite(recon_b)))

    print("KERNEL_OK")
</pallas_src>

<mosaic_0001>
module attributes {stable_mosaic.version = 11 : i64} {
  func.func @_sae_kernel(%arg0: i32, %arg1: memref<16x128xf32, #tpu.memory_space<vmem>>, %arg2: memref<16x128xf32, #tpu.memory_space<vmem>>, %arg3: memref<128x128xf32, #tpu.memory_space<vmem>>, %arg4: memref<1x128xf32, #tpu.memory_space<vmem>>, %arg5: memref<128x128xf32, #tpu.memory_space<vmem>>, %arg6: memref<1x128xf32, #tpu.memory_space<vmem>>, %arg7: memref<128x128xf32, #tpu.memory_space<vmem>>, %arg8: memref<1x128xf32, #tpu.memory_space<vmem>>, %arg9: memref<128x128xf32, #tpu.memory_space<vmem>>, %arg10: memref<16x128xf32, #tpu.memory_space<vmem>>, %arg11: memref<1x1x128xf32, #tpu.memory_space<vmem>>) attributes {dimension_semantics = [#tpu.dimension_semantics<parallel>], iteration_bounds = array<i64: 1>, scalar_prefetch = 0 : i64, scratch_operands = 0 : i64, tpu.core_type = #tpu.core_type<tc>, window_params = [{transform_indices = @transform_0, window_bounds = array<i64: 16, 128>}, {pipeline_mode = #tpu.pipeline_mode<synchronous>, transform_indices = @transform_1, window_bounds = array<i64: 16, 128>}, {pipeline_mode = #tpu.pipeline_mode<synchronous>, transform_indices = @transform_2, window_bounds = array<i64: 128, 128>}, {pipeline_mode = #tpu.pipeline_mode<synchronous>, transform_indices = @transform_3, window_bounds = array<i64: 1, 128>}, {pipeline_mode = #tpu.pipeline_mode<synchronous>, transform_indices = @transform_4, window_bounds = array<i64: 128, 128>}, {pipeline_mode = #tpu.pipeline_mode<synchronous>, transform_indices = @transform_5, window_bounds = array<i64: 1, 128>}, {pipeline_mode = #tpu.pipeline_mode<synchronous>, transform_indices = @transform_6, window_bounds = array<i64: 128, 128>}, {pipeline_mode = #tpu.pipeline_mode<synchronous>, transform_indices = @transform_7, window_bounds = array<i64: 1, 128>}, {pipeline_mode = #tpu.pipeline_mode<synchronous>, transform_indices = @transform_8, window_bounds = array<i64: 128, 128>}, {transform_indices = @transform_9, window_bounds = array<i64: 16, 128>}, {transform_indices = @transform_10, window_bounds = array<i64: 1, 1, 128>}]} {
    %c0 = arith.constant 0 : index
    %c0_0 = arith.constant 0 : index
    %0 = vector.load %arg2[%c0, %c0_0] : memref<16x128xf32, #tpu.memory_space<vmem>>, vector<16x128xf32>
    %c0_1 = arith.constant 0 : index
    %c0_2 = arith.constant 0 : index
    %1 = vector.load %arg1[%c0_1, %c0_2] : memref<16x128xf32, #tpu.memory_space<vmem>>, vector<16x128xf32>
    %2 = arith.subf %1, %0 : vector<16x128xf32>
    %c0_3 = arith.constant 0 : index
    %c0_4 = arith.constant 0 : index
    %3 = vector.load %arg3[%c0_3, %c0_4] : memref<128x128xf32, #tpu.memory_space<vmem>>, vector<128x128xf32>
    %cst = arith.constant dense<0.000000e+00> : vector<16x128xf32>
    %4 = tpu.matmul %2, %3, %cst {dimension_numbers = #tpu.dot_dimension_numbers<[1], [0], [0], [1], [0, 0, 1, 1], [], []>} : vector<16x128xf32>, vector<128x128xf32>, vector<16x128xf32> -> vector<16x128xf32>
    %c0_5 = arith.constant 0 : index
    %c0_6 = arith.constant 0 : index
    %5 = vector.load %arg4[%c0_5, %c0_6] : memref<1x128xf32, #tpu.memory_space<vmem>>, vector<1x128xf32>
    %6 = vector.broadcast %5 : vector<1x128xf32> to vector<16x128xf32>
    %7 = arith.addf %4, %6 : vector<16x128xf32>
    %cst_7 = arith.constant 5.000000e-01 : f32
    %8 = vector.broadcast %cst_7 : f32 to vector<16x128xf32>
    %9 = arith.mulf %8, %7 : vector<16x128xf32>
    %cst_8 = arith.constant 0.707106769 : f32
    %10 = vector.broadcast %cst_8 : f32 to vector<16x128xf32>
    %11 = arith.mulf %7, %10 : vector<16x128xf32>
    %12 = math.erf %11 : vector<16x128xf32>
    %cst_9 = arith.constant 1.000000e+00 : f32
    %13 = vector.broadcast %cst_9 : f32 to vector<16x128xf32>
    %14 = arith.addf %13, %12 : vector<16x128xf32>
    %15 = arith.mulf %9, %14 : vector<16x128xf32>
    %c0_10 = arith.constant 0 : index
    %c0_11 = arith.constant 0 : index
    %16 = vector.load %arg5[%c0_10, %c0_11] : memref<128x128xf32, #tpu.memory_space<vmem>>, vector<128x128xf32>
    %cst_12 = arith.constant dense<0.000000e+00> : vector<16x128xf32>
    %17 = tpu.matmul %15, %16, %cst_12 {dimension_numbers = #tpu.dot_dimension_numbers<[1], [0], [0], [1], [0, 0, 1, 1], [], []>} : vector<16x128xf32>, vector<128x128xf32>, vector<16x128xf32> -> vector<16x128xf32>
    %c0_13 = arith.constant 0 : index
    %c0_14 = arith.constant 0 : index
    %18 = vector.load %arg6[%c0_13, %c0_14] : memref<1x128xf32, #tpu.memory_space<vmem>>, vector<1x128xf32>
    %19 = vector.broadcast %18 : vector<1x128xf32> to vector<16x128xf32>
    %20 = arith.addf %17, %19 : vector<16x128xf32>
    %cst_15 = arith.constant 0x7F800000 : f32
    %21 = vector.broadcast %cst_15 : f32 to vector<16x1xf32>
    %c0_i32 = arith.constant 0 : i32
    %22 = vector.broadcast %21 : vector<16x1xf32> to vector<16x128xf32>
    %23 = arith.cmpf olt, %20, %22 : vector<16x128xf32>
    %cst_16 = arith.constant -3.40282347E+38 : f32
    %24 = vector.broadcast %cst_16 : f32 to vector<16x128xf32>
    %25 = arith.select %23, %20, %24 : vector<16x128xi1>, vector<16x128xf32>
    %cst_17 = arith.constant dense<0xFF800000> : vector<16xf32>
    %26 = vector.multi_reduction <maximumf>, %25, %cst_17 [1] : vector<16x128xf32> to vector<16xf32>
    %27 = vector.shape_cast %26 : vector<16xf32> to vector<16x1xf32>
    %c1_i32 = arith.constant 1 : i32
    %28 = vector.broadcast %27 : vector<16x1xf32> to vector<16x128xf32>
    %29 = arith.cmpf olt, %20, %28 : vector<16x128xf32>
    %cst_18 = arith.constant -3.40282347E+38 : f32
    %30 = vector.broadcast %cst_18 : f32 to vector<16x128xf32>
    %31 = arith.select %29, %20, %30 : vector<16x128xi1>, vector<16x128xf32>
    %cst_19 = arith.constant dense<0xFF800000> : vector<16xf32>
    %32 = vector.multi_reduction <maximumf>, %31, %cst_19 [1] : vector<16x128xf32> to vector<16xf32>
    %33 = vector.shape_cast %32 : vector<16xf32> to vector<16x1xf32>
    %c2_i32 = arith.constant 2 : i32
    %34 = vector.broadcast %33 : vector<16x1xf32> to vector<16x128xf32>
    %35 = arith.cmpf olt, %20, %34 : vector<16x128xf32>
    %cst_20 = arith.constant -3.40282347E+38 : f32
    %36 = vector.broadcast %cst_20 : f32 to vector<16x128xf32>
    %37 = arith.select %35, %20, %36 : vector<16x128xi1>, vector<16x128xf32>
    %cst_21 = arith.constant dense<0xFF800000> : vector<16xf32>
    %38 = vector.multi_reduction <maximumf>, %37, %cst_21 [1] : vector<16x128xf32> to vector<16xf32>
    %39 = vector.shape_cast %38 : vector<16xf32> to vector<16x1xf32>
    %c3_i32 = arith.constant 3 : i32
    %40 = vector.broadcast %39 : vector<16x1xf32> to vector<16x128xf32>
    %41 = arith.cmpf olt, %20, %40 : vector<16x128xf32>
    %cst_22 = arith.constant -3.40282347E+38 : f32
    %42 = vector.broadcast %cst_22 : f32 to vector<16x128xf32>
    %43 = arith.select %41, %20, %42 : vector<16x128xi1>, vector<16x128xf32>
    %cst_23 = arith.constant dense<0xFF800000> : vector<16xf32>
    %44 = vector.multi_reduction <maximumf>, %43, %cst_23 [1] : vector<16x128xf32> to vector<16xf32>
    %45 = vector.shape_cast %44 : vector<16xf32> to vector<16x1xf32>
    %c4_i32 = arith.constant 4 : i32
    %46 = vector.broadcast %45 : vector<16x1xf32> to vector<16x128xf32>
    %47 = arith.cmpf olt, %20, %46 : vector<16x128xf32>
    %cst_24 = arith.constant -3.40282347E+38 : f32
    %48 = vector.broadcast %cst_24 : f32 to vector<16x128xf32>
    %49 = arith.select %47, %20, %48 : vector<16x128xi1>, vector<16x128xf32>
    %cst_25 = arith.constant dense<0xFF800000> : vector<16xf32>
    %50 = vector.multi_reduction <maximumf>, %49, %cst_25 [1] : vector<16x128xf32> to vector<16xf32>
    %51 = vector.shape_cast %50 : vector<16xf32> to vector<16x1xf32>
    %c5_i32 = arith.constant 5 : i32
    %52 = vector.broadcast %51 : vector<16x1xf32> to vector<16x128xf32>
    %53 = arith.cmpf olt, %20, %52 : vector<16x128xf32>
    %cst_26 = arith.constant -3.40282347E+38 : f32
    %54 = vector.broadcast %cst_26 : f32 to vector<16x128xf32>
    %55 = arith.select %53, %20, %54 : vector<16x128xi1>, vector<16x128xf32>
    %cst_27 = arith.constant dense<0xFF800000> : vector<16xf32>
    %56 = vector.multi_reduction <maximumf>, %55, %cst_27 [1] : vector<16x128xf32> to vector<16xf32>
    %57 = vector.shape_cast %56 : vector<16xf32> to vector<16x1xf32>
    %c6_i32 = arith.constant 6 : i32
    %58 = vector.broadcast %57 : vector<16x1xf32> to vector<16x128xf32>
    %59 = arith.cmpf olt, %20, %58 : vector<16x128xf32>
    %cst_28 = arith.constant -3.40282347E+38 : f32
    %60 = vector.broadcast %cst_28 : f32 to vector<16x128xf32>
    %61 = arith.select %59, %20, %60 : vector<16x128xi1>, vector<16x128xf32>
    %cst_29 = arith.constant dense<0xFF800000> : vector<16xf32>
    %62 = vector.multi_reduction <maximumf>, %61, %cst_29 [1] : vector<16x128xf32> to vector<16xf32>
    %63 = vector.shape_cast %62 : vector<16xf32> to vector<16x1xf32>
    %c7_i32 = arith.constant 7 : i32
    %64 = vector.broadcast %63 : vector<16x1xf32> to vector<16x128xf32>
    %65 = arith.cmpf olt, %20, %64 : vector<16x128xf32>
    %cst_30 = arith.constant -3.40282347E+38 : f32
    %66 = vector.broadcast %cst_30 : f32 to vector<16x128xf32>
    %67 = arith.select %65, %20, %66 : vector<16x128xi1>, vector<16x128xf32>
    %cst_31 = arith.constant dense<0xFF800000> : vector<16xf32>
    %68 = vector.multi_reduction <maximumf>, %67, %cst_31 [1] : vector<16x128xf32> to vector<16xf32>
    %69 = vector.shape_cast %68 : vector<16xf32> to vector<16x1xf32>
    %c8_i32 = arith.constant 8 : i32
    %70 = vector.broadcast %69 : vector<16x1xf32> to vector<16x128xf32>
    %71 = arith.cmpf olt, %20, %70 : vector<16x128xf32>
    %cst_32 = arith.constant -3.40282347E+38 : f32
    %72 = vector.broadcast %cst_32 : f32 to vector<16x128xf32>
    %73 = arith.select %71, %20, %72 : vector<16x128xi1>, vector<16x128xf32>
    %cst_33 = arith.constant dense<0xFF800000> : vector<16xf32>
    %74 = vector.multi_reduction <maximumf>, %73, %cst_33 [1] : vector<16x128xf32> to vector<16xf32>
    %75 = vector.shape_cast %74 : vector<16xf32> to vector<16x1xf32>
    %c9_i32 = arith.constant 9 : i32
    %76 = vector.broadcast %75 : vector<16x1xf32> to vector<16x128xf32>
    %77 = arith.cmpf olt, %20, %76 : vector<16x128xf32>
    %cst_34 = arith.constant -3.40282347E+38 : f32
    %78 = vector.broadcast %cst_34 : f32 to vector<16x128xf32>
    %79 = arith.select %77, %20, %78 : vector<16x128xi1>, vector<16x128xf32>
    %cst_35 = arith.constant dense<0xFF800000> : vector<16xf32>
    %80 = vector.multi_reduction <maximumf>, %79, %cst_35 [1] : vector<16x128xf32> to vector<16xf32>
    %81 = vector.shape_cast %80 : vector<16xf32> to vector<16x1xf32>
    %c10_i32 = arith.constant 10 : i32
    %82 = vector.broadcast %81 : vector<16x1xf32> to vector<16x128xf32>
    %83 = arith.cmpf olt, %20, %82 : vector<16x128xf32>
    %cst_36 = arith.constant -3.40282347E+38 : f32
    %84 = vector.broadcast %cst_36 : f32 to vector<16x128xf32>
    %85 = arith.select %83, %20, %84 : vector<16x128xi1>, vector<16x128xf32>
    %cst_37 = arith.constant dense<0xFF800000> : vector<16xf32>
    %86 = vector.multi_reduction <maximumf>, %85, %cst_37 [1] : vector<16x128xf32> to vector<16xf32>
    %87 = vector.shape_cast %86 : vector<16xf32> to vector<16x1xf32>
    %c11_i32 = arith.constant 11 : i32
    %88 = vector.broadcast %87 : vector<16x1xf32> to vector<16x128xf32>
    %89 = arith.cmpf olt, %20, %88 : vector<16x128xf32>
    %cst_38 = arith.constant -3.40282347E+38 : f32
    %90 = vector.broadcast %cst_38 : f32 to vector<16x128xf32>
    %91 = arith.select %89, %20, %90 : vector<16x128xi1>, vector<16x128xf32>
    %cst_39 = arith.constant dense<0xFF800000> : vector<16xf32>
    %92 = vector.multi_reduction <maximumf>, %91, %cst_39 [1] : vector<16x128xf32> to vector<16xf32>
    %93 = vector.shape_cast %92 : vector<16xf32> to vector<16x1xf32>
    %c12_i32 = arith.constant 12 : i32
    %94 = vector.broadcast %93 : vector<16x1xf32> to vector<16x128xf32>
    %95 = arith.cmpf olt, %20, %94 : vector<16x128xf32>
    %cst_40 = arith.constant -3.40282347E+38 : f32
    %96 = vector.broadcast %cst_40 : f32 to vector<16x128xf32>
    %97 = arith.select %95, %20, %96 : vector<16x128xi1>, vector<16x128xf32>
    %cst_41 = arith.constant dense<0xFF800000> : vector<16xf32>
    %98 = vector.multi_reduction <maximumf>, %97, %cst_41 [1] : vector<16x128xf32> to vector<16xf32>
    %99 = vector.shape_cast %98 : vector<16xf32> to vector<16x1xf32>
    %c13_i32 = arith.constant 13 : i32
    %100 = vector.broadcast %99 : vector<16x1xf32> to vector<16x128xf32>
    %101 = arith.cmpf olt, %20, %100 : vector<16x128xf32>
    %cst_42 = arith.constant -3.40282347E+38 : f32
    %102 = vector.broadcast %cst_42 : f32 to vector<16x128xf32>
    %103 = arith.select %101, %20, %102 : vector<16x128xi1>, vector<16x128xf32>
    %cst_43 = arith.constant dense<0xFF800000> : vector<16xf32>
    %104 = vector.multi_reduction <maximumf>, %103, %cst_43 [1] : vector<16x128xf32> to vector<16xf32>
    %105 = vector.shape_cast %104 : vector<16xf32> to vector<16x1xf32>
    %c14_i32 = arith.constant 14 : i32
    %106 = vector.broadcast %105 : vector<16x1xf32> to vector<16x128xf32>
    %107 = arith.cmpf olt, %20, %106 : vector<16x128xf32>
    %cst_44 = arith.constant -3.40282347E+38 : f32
    %108 = vector.broadcast %cst_44 : f32 to vector<16x128xf32>
    %109 = arith.select %107, %20, %108 : vector<16x128xi1>, vector<16x128xf32>
    %cst_45 = arith.constant dense<0xFF800000> : vector<16xf32>
    %110 = vector.multi_reduction <maximumf>, %109, %cst_45 [1] : vector<16x128xf32> to vector<16xf32>
    %111 = vector.shape_cast %110 : vector<16xf32> to vector<16x1xf32>
    %c15_i32 = arith.constant 15 : i32
    %112 = vector.broadcast %111 : vector<16x1xf32> to vector<16x128xf32>
    %113 = arith.cmpf olt, %20, %112 : vector<16x128xf32>
    %cst_46 = arith.constant -3.40282347E+38 : f32
    %114 = vector.broadcast %cst_46 : f32 to vector<16x128xf32>
    %115 = arith.select %113, %20, %114 : vector<16x128xi1>, vector<16x128xf32>
    %cst_47 = arith.constant dense<0xFF800000> : vector<16xf32>
    %116 = vector.multi_reduction <maximumf>, %115, %cst_47 [1] : vector<16x128xf32> to vector<16xf32>
    %117 = vector.shape_cast %116 : vector<16xf32> to vector<16x1xf32>
    %118 = vector.broadcast %117 : vector<16x1xf32> to vector<16x128xf32>
    %119 = arith.cmpf oge, %20, %118 : vector<16x128xf32>
    %120 = arith.extui %119 : vector<16x128xi1> to vector<16x128xi32>
    %121 = arith.sitofp %120 : vector<16x128xi32> to vector<16x128xf32>
    %cst_48 = arith.constant dense<0.000000e+00> : vector<128xf32>
    %122 = vector.multi_reduction <add>, %121, %cst_48 [0] : vector<16x128xf32> to vector<128xf32>
    %123 = vector.shape_cast %122 : vector<128xf32> to vector<1x128xf32>
    %124 = vector.shape_cast %123 : vector<1x128xf32> to vector<1x1x128xf32>
    %c0_49 = arith.constant 0 : index
    %c0_50 = arith.constant 0 : index
    %c0_51 = arith.constant 0 : index
    %125 = vector.load %arg11[%c0_49, %c0_50, %c0_51] : memref<1x1x128xf32, #tpu.memory_space<vmem>>, vector<1x1x128xf32>
    tpu.vector_store %arg11[%c0_49, %c0_50, %c0_51], %124 {strides = array<i32>} : memref<1x1x128xf32, #tpu.memory_space<vmem>>, vector<1x1x128xf32>,
    %cst_52 = arith.constant 0.000000e+00 : f32
    %126 = vector.broadcast %cst_52 : f32 to vector<16x1xf32>
    %127 = arith.maximumf %117, %126 : vector<16x1xf32>
    %128 = vector.broadcast %127 : vector<16x1xf32> to vector<16x128xf32>
    %129 = arith.cmpf oge, %20, %128 : vector<16x128xf32>
    %cst_53 = arith.constant 0.000000e+00 : f32
    %130 = vector.broadcast %cst_53 : f32 to vector<16x128xf32>
    %131 = arith.select %129, %20, %130 : vector<16x128xi1>, vector<16x128xf32>
    %c0_54 = arith.constant 0 : index
    %c0_55 = arith.constant 0 : index
    %132 = vector.load %arg7[%c0_54, %c0_55] : memref<128x128xf32, #tpu.memory_space<vmem>>, vector<128x128xf32>
    %cst_56 = arith.constant dense<0.000000e+00> : vector<16x128xf32>
    %133 = tpu.matmul %131, %132, %cst_56 {dimension_numbers = #tpu.dot_dimension_numbers<[1], [0], [0], [1], [0, 0, 1, 1], [], []>} : vector<16x128xf32>, vector<128x128xf32>, vector<16x128xf32> -> vector<16x128xf32>
    %c0_57 = arith.constant 0 : index
    %c0_58 = arith.constant 0 : index
    %134 = vector.load %arg8[%c0_57, %c0_58] : memref<1x128xf32, #tpu.memory_space<vmem>>, vector<1x128xf32>
    %135 = vector.broadcast %134 : vector<1x128xf32> to vector<16x128xf32>
    %136 = arith.addf %133, %135 : vector<16x128xf32>
    %cst_59 = arith.constant 5.000000e-01 : f32
    %137 = vector.broadcast %cst_59 : f32 to vector<16x128xf32>
    %138 = arith.mulf %137, %136 : vector<16x128xf32>
    %cst_60 = arith.constant 0.707106769 : f32
    %139 = vector.broadcast %cst_60 : f32 to vector<16x128xf32>
    %140 = arith.mulf %136, %139 : vector<16x128xf32>
    %141 = math.erf %140 : vector<16x128xf32>
    %cst_61 = arith.constant 1.000000e+00 : f32
    %142 = vector.broadcast %cst_61 : f32 to vector<16x128xf32>
    %143 = arith.addf %142, %141 : vector<16x128xf32>
    %144 = arith.mulf %138, %143 : vector<16x128xf32>
    %c0_62 = arith.constant 0 : index
    %c0_63 = arith.constant 0 : index
    %145 = vector.load %arg9[%c0_62, %c0_63] : memref<128x128xf32, #tpu.memory_space<vmem>>, vector<128x128xf32>
    %cst_64 = arith.constant dense<0.000000e+00> : vector<16x128xf32>
    %146 = tpu.matmul %144, %145, %cst_64 {dimension_numbers = #tpu.dot_dimension_numbers<[1], [0], [0], [1], [0, 0, 1, 1], [], []>} : vector<16x128xf32>, vector<128x128xf32>, vector<16x128xf32> -> vector<16x128xf32>
    %147 = arith.addf %146, %0 : vector<16x128xf32>
    %c0_65 = arith.constant 0 : index
    %c0_66 = arith.constant 0 : index
    %148 = vector.load %arg10[%c0_65, %c0_66] : memref<16x128xf32, #tpu.memory_space<vmem>>, vector<16x128xf32>
    tpu.vector_store %arg10[%c0_65, %c0_66], %147 {strides = array<i32>} : memref<16x128xf32, #tpu.memory_space<vmem>>, vector<16x128xf32>,
    return
  }
  func.func @transform_0(%arg0: i32) -> (i32, i32) {
    %c0_i32 = arith.constant 0 : i32
    %c0_i32_0 = arith.constant 0 : i32
    return %arg0, %c0_i32 : i32, i32
  }
  func.func @transform_1(%arg0: i32) -> (i32, i32) {
    %c0_i32 = arith.constant 0 : i32
    %c0_i32_0 = arith.constant 0 : i32
    %c0_i32_1 = arith.constant 0 : i32
    return %c0_i32, %c0_i32_0 : i32, i32
  }
  func.func @transform_2(%arg0: i32) -> (i32, i32) {
    %c0_i32 = arith.constant 0 : i32
    %c0_i32_0 = arith.constant 0 : i32
    %c0_i32_1 = arith.constant 0 : i32
    return %c0_i32, %c0_i32_0 : i32, i32
  }
  func.func @transform_3(%arg0: i32) -> (i32, i32) {
    %c0_i32 = arith.constant 0 : i32
    %c0_i32_0 = arith.constant 0 : i32
    %c0_i32_1 = arith.constant 0 : i32
    return %c0_i32, %c0_i32_0 : i32, i32
  }
  func.func @transform_4(%arg0: i32) -> (i32, i32) {
    %c0_i32 = arith.constant 0 : i32
    %c0_i32_0 = arith.constant 0 : i32
    %c0_i32_1 = arith.constant 0 : i32
    return %c0_i32, %c0_i32_0 : i32, i32
  }
  func.func @transform_5(%arg0: i32) -> (i32, i32) {
    %c0_i32 = arith.constant 0 : i32
    %c0_i32_0 = arith.constant 0 : i32
    %c0_i32_1 = arith.constant 0 : i32
    return %c0_i32, %c0_i32_0 : i32, i32
  }
  func.func @transform_6(%arg0: i32) -> (i32, i32) {
    %c0_i32 = arith.constant 0 : i32
    %c0_i32_0 = arith.constant 0 : i32
    %c0_i32_1 = arith.constant 0 : i32
    return %c0_i32, %c0_i32_0 : i32, i32
  }
  func.func @transform_7(%arg0: i32) -> (i32, i32) {
    %c0_i32 = arith.constant 0 : i32
    %c0_i32_0 = arith.constant 0 : i32
    %c0_i32_1 = arith.constant 0 : i32
    return %c0_i32, %c0_i32_0 : i32, i32
  }
  func.func @transform_8(%arg0: i32) -> (i32, i32) {
    %c0_i32 = arith.constant 0 : i32
    %c0_i32_0 = arith.constant 0 : i32
    %c0_i32_1 = arith.constant 0 : i32
    return %c0_i32, %c0_i32_0 : i32, i32
  }
  func.func @transform_9(%arg0: i32) -> (i32, i32) {
    %c0_i32 = arith.constant 0 : i32
    %c0_i32_0 = arith.constant 0 : i32
    return %arg0, %c0_i32 : i32, i32
  }
  func.func @transform_10(%arg0: i32) -> (i32, i32, i32) {
    %c0_i32 = arith.constant 0 : i32
    %c0_i32_0 = arith.constant 0 : i32
    %c0_i32_1 = arith.constant 0 : i32
    return %arg0, %c0_i32, %c0_i32_0 : i32, i32, i32
  }
}

module attributes {stable_mosaic.version = 11 : i64} {
  func.func @_sae_kernel(%arg0: i32, %arg1: memref<16x128xf32, #tpu.memory_space<vmem>>, %arg2: memref<16x128xf32, #tpu.memory_space<vmem>>, %arg3: memref<128x128xf32, #tpu.memory_space<vmem>>, %arg4: memref<1x128xf32, #tpu.memory_space<vmem>>, %arg5: memref<128x128xf32, #tpu.memory_space<vmem>>, %arg6: memref<1x128xf32, #tpu.memory_space<vmem>>, %arg7: memref<128x128xf32, #tpu.memory_space<vmem>>, %arg8: memref<1x128xf32, #tpu.memory_space<vmem>>, %arg9: memref<128x128xf32, #tpu.memory_space<vmem>>, %arg10: memref<16x128xf32, #tpu.memory_space<vmem>>, %arg11: memref<1x1x128xf32, #tpu.memory_space<vmem>>) attributes {dimension_semantics = [#tpu.dimension_semantics<parallel>], iteration_bounds = array<i64: 1>, scalar_prefetch = 0 : i64, scratch_operands = 0 : i64, tpu.core_type = #tpu.core_type<tc>, window_params = [{transform_indices = @transform_0, window_bounds = array<i64: 16, 128>}, {pipeline_mode = #tpu.pipeline_mode<synchronous>, transform_indices = @transform_1, window_bounds = array<i64: 16, 128>}, {pipeline_mode = #tpu.pipeline_mode<synchronous>, transform_indices = @transform_2, window_bounds = array<i64: 128, 128>}, {pipeline_mode = #tpu.pipeline_mode<synchronous>, transform_indices = @transform_3, window_bounds = array<i64: 1, 128>}, {pipeline_mode = #tpu.pipeline_mode<synchronous>, transform_indices = @transform_4, window_bounds = array<i64: 128, 128>}, {pipeline_mode = #tpu.pipeline_mode<synchronous>, transform_indices = @transform_5, window_bounds = array<i64: 1, 128>}, {pipeline_mode = #tpu.pipeline_mode<synchronous>, transform_indices = @transform_6, window_bounds = array<i64: 128, 128>}, {pipeline_mode = #tpu.pipeline_mode<synchronous>, transform_indices = @transform_7, window_bounds = array<i64: 1, 128>}, {pipeline_mode = #tpu.pipeline_mode<synchronous>, transform_indices = @transform_8, window_bounds = array<i64: 128, 128>}, {transform_indices = @transform_9, window_bounds = array<i64: 16, 128>}, {transform_indices = @transform_10, window_bounds = array<i64: 1, 1, 128>}]} {
    %c0 = arith.constant 0 : index
    %c0_0 = arith.constant 0 : index
    %0 = vector.load %arg2[%c0, %c0_0] : memref<16x128xf32, #tpu.memory_space<vmem>>, vector<16x128xf32>
    %c0_1 = arith.constant 0 : index
    %c0_2 = arith.constant 0 : index
    %1 = vector.load %arg1[%c0_1, %c0_2] : memref<16x128xf32, #tpu.memory_space<vmem>>, vector<16x128xf32>
    %2 = arith.subf %1, %0 : vector<16x128xf32>
    %c0_3 = arith.constant 0 : index
    %c0_4 = arith.constant 0 : index
    %3 = vector.load %arg3[%c0_3, %c0_4] : memref<128x128xf32, #tpu.memory_space<vmem>>, vector<128x128xf32>
    %cst = arith.constant dense<0.000000e+00> : vector<16x128xf32>
    %4 = tpu.matmul %2, %3, %cst {dimension_numbers = #tpu.dot_dimension_numbers<[1], [0], [0], [1], [0, 0, 1, 1], [], []>} : vector<16x128xf32>, vector<128x128xf32>, vector<16x128xf32> -> vector<16x128xf32>
    %c0_5 = arith.constant 0 : index
    %c0_6 = arith.constant 0 : index
    %5 = vector.load %arg4[%c0_5, %c0_6] : memref<1x128xf32, #tpu.memory_space<vmem>>, vector<1x128xf32>
    %6 = vector.broadcast %5 : vector<1x128xf32> to vector<16x128xf32>
    %7 = arith.addf %4, %6 : vector<16x128xf32>
    %cst_7 = arith.constant 5.000000e-01 : f32
    %8 = vector.broadcast %cst_7 : f32 to vector<16x128xf32>
    %9 = arith.mulf %8, %7 : vector<16x128xf32>
    %cst_8 = arith.constant 0.707106769 : f32
    %10 = vector.broadcast %cst_8 : f32 to vector<16x128xf32>
    %11 = arith.mulf %7, %10 : vector<16x128xf32>
    %12 = math.erf %11 : vector<16x128xf32>
    %cst_9 = arith.constant 1.000000e+00 : f32
    %13 = vector.broadcast %cst_9 : f32 to vector<16x128xf32>
    %14 = arith.addf %13, %12 : vector<16x128xf32>
    %15 = arith.mulf %9, %14 : vector<16x128xf32>
    %c0_10 = arith.constant 0 : index
    %c0_11 = arith.constant 0 : index
    %16 = vector.load %arg5[%c0_10, %c0_11] : memref<128x128xf32, #tpu.memory_space<vmem>>, vector<128x128xf32>
    %cst_12 = arith.constant dense<0.000000e+00> : vector<16x128xf32>
    %17 = tpu.matmul %15, %16, %cst_12 {dimension_numbers = #tpu.dot_dimension_numbers<[1], [0], [0], [1], [0, 0, 1, 1], [], []>} : vector<16x128xf32>, vector<128x128xf32>, vector<16x128xf32> -> vector<16x128xf32>
    %c0_13 = arith.constant 0 : index
    %c0_14 = arith.constant 0 : index
    %18 = vector.load %arg6[%c0_13, %c0_14] : memref<1x128xf32, #tpu.memory_space<vmem>>, vector<1x128xf32>
    %19 = vector.broadcast %18 : vector<1x128xf32> to vector<16x128xf32>
    %20 = arith.addf %17, %19 : vector<16x128xf32>
    %cst_15 = arith.constant 0x7F800000 : f32
    %21 = vector.broadcast %cst_15 : f32 to vector<16x1xf32>
    %c0_i32 = arith.constant 0 : i32
    %22 = vector.broadcast %21 : vector<16x1xf32> to vector<16x128xf32>
    %23 = arith.cmpf olt, %20, %22 : vector<16x128xf32>
    %cst_16 = arith.constant -3.40282347E+38 : f32
    %24 = vector.broadcast %cst_16 : f32 to vector<16x128xf32>
    %25 = arith.select %23, %20, %24 : vector<16x128xi1>, vector<16x128xf32>
    %cst_17 = arith.constant dense<0xFF800000> : vector<16xf32>
    %26 = vector.multi_reduction <maximumf>, %25, %cst_17 [1] : vector<16x128xf32> to vector<16xf32>
    %27 = vector.shape_cast %26 : vector<16xf32> to vector<16x1xf32>
    %c1_i32 = arith.constant 1 : i32
    %28 = vector.broadcast %27 : vector<16x1xf32> to vector<16x128xf32>
    %29 = arith.cmpf olt, %20, %28 : vector<16x128xf32>
    %cst_18 = arith.constant -3.40282347E+38 : f32
    %30 = vector.broadcast %cst_18 : f32 to vector<16x128xf32>
    %31 = arith.select %29, %20, %30 : vector<16x128xi1>, vector<16x128xf32>
    %cst_19 = arith.constant dense<0xFF800000> : vector<16xf32>
    %32 = vector.multi_reduction <maximumf>, %31, %cst_19 [1] : vector<16x128xf32> to vector<16xf32>
    %33 = vector.shape_cast %32 : vector<16xf32> to vector<16x1xf32>
    %c2_i32 = arith.constant 2 : i32
    %34 = vector.broadcast %33 : vector<16x1xf32> to vector<16x128xf32>
    %35 = arith.cmpf olt, %20, %34 : vector<16x128xf32>
    %cst_20 = arith.constant -3.40282347E+38 : f32
    %36 = vector.broadcast %cst_20 : f32 to vector<16x128xf32>
    %37 = arith.select %35, %20, %36 : vector<16x128xi1>, vector<16x128xf32>
    %cst_21 = arith.constant dense<0xFF800000> : vector<16xf32>
    %38 = vector.multi_reduction <maximumf>, %37, %cst_21 [1] : vector<16x128xf32> to vector<16xf32>
    %39 = vector.shape_cast %38 : vector<16xf32> to vector<16x1xf32>
    %c3_i32 = arith.constant 3 : i32
    %40 = vector.broadcast %39 : vector<16x1xf32> to vector<16x128xf32>
    %41 = arith.cmpf olt, %20, %40 : vector<16x128xf32>
    %cst_22 = arith.constant -3.40282347E+38 : f32
    %42 = vector.broadcast %cst_22 : f32 to vector<16x128xf32>
    %43 = arith.select %41, %20, %42 : vector<16x128xi1>, vector<16x128xf32>
    %cst_23 = arith.constant dense<0xFF800000> : vector<16xf32>
    %44 = vector.multi_reduction <maximumf>, %43, %cst_23 [1] : vector<16x128xf32> to vector<16xf32>
    %45 = vector.shape_cast %44 : vector<16xf32> to vector<16x1xf32>
    %c4_i32 = arith.constant 4 : i32
    %46 = vector.broadcast %45 : vector<16x1xf32> to vector<16x128xf32>
    %47 = arith.cmpf olt, %20, %46 : vector<16x128xf32>
    %cst_24 = arith.constant -3.40282347E+38 : f32
    %48 = vector.broadcast %cst_24 : f32 to vector<16x128xf32>
    %49 = arith.select %47, %20, %48 : vector<16x128xi1>, vector<16x128xf32>
    %cst_25 = arith.constant dense<0xFF800000> : vector<16xf32>
    %50 = vector.multi_reduction <maximumf>, %49, %cst_25 [1] : vector<16x128xf32> to vector<16xf32>
    %51 = vector.shape_cast %50 : vector<16xf32> to vector<16x1xf32>
    %c5_i32 = arith.constant 5 : i32
    %52 = vector.broadcast %51 : vector<16x1xf32> to vector<16x128xf32>
    %53 = arith.cmpf olt, %20, %52 : vector<16x128xf32>
    %cst_26 = arith.constant -3.40282347E+38 : f32
    %54 = vector.broadcast %cst_26 : f32 to vector<16x128xf32>
    %55 = arith.select %53, %20, %54 : vector<16x128xi1>, vector<16x128xf32>
    %cst_27 = arith.constant dense<0xFF800000> : vector<16xf32>
    %56 = vector.multi_reduction <maximumf>, %55, %cst_27 [1] : vector<16x128xf32> to vector<16xf32>
    %57 = vector.shape_cast %56 : vector<16xf32> to vector<16x1xf32>
    %c6_i32 = arith.constant 6 : i32
    %58 = vector.broadcast %57 : vector<16x1xf32> to vector<16x128xf32>
    %59 = arith.cmpf olt, %20, %58 : vector<16x128xf32>
    %cst_28 = arith.constant -3.40282347E+38 : f32
    %60 = vector.broadcast %cst_28 : f32 to vector<16x128xf32>
    %61 = arith.select %59, %20, %60 : vector<16x128xi1>, vector<16x128xf32>
    %cst_29 = arith.constant dense<0xFF800000> : vector<16xf32>
    %62 = vector.multi_reduction <maximumf>, %61, %cst_29 [1] : vector<16x128xf32> to vector<16xf32>
    %63 = vector.shape_cast %62 : vector<16xf32> to vector<16x1xf32>
    %c7_i32 = arith.constant 7 : i32
    %64 = vector.broadcast %63 : vector<16x1xf32> to vector<16x128xf32>
    %65 = arith.cmpf olt, %20, %64 : vector<16x128xf32>
    %cst_30 = arith.constant -3.40282347E+38 : f32
    %66 = vector.broadcast %cst_30 : f32 to vector<16x128xf32>
    %67 = arith.select %65, %20, %66 : vector<16x128xi1>, vector<16x128xf32>
    %cst_31 = arith.constant dense<0xFF800000> : vector<16xf32>
    %68 = vector.multi_reduction <maximumf>, %67, %cst_31 [1] : vector<16x128xf32> to vector<16xf32>
    %69 = vector.shape_cast %68 : vector<16xf32> to vector<16x1xf32>
    %c8_i32 = arith.constant 8 : i32
    %70 = vector.broadcast %69 : vector<16x1xf32> to vector<16x128xf32>
    %71 = arith.cmpf olt, %20, %70 : vector<16x128xf32>
    %cst_32 = arith.constant -3.40282347E+38 : f32
    %72 = vector.broadcast %cst_32 : f32 to vector<16x128xf32>
    %73 = arith.select %71, %20, %72 : vector<16x128xi1>, vector<16x128xf32>
    %cst_33 = arith.constant dense<0xFF800000> : vector<16xf32>
    %74 = vector.multi_reduction <maximumf>, %73, %cst_33 [1] : vector<16x128xf32> to vector<16xf32>
    %75 = vector.shape_cast %74 : vector<16xf32> to vector<16x1xf32>
    %c9_i32 = arith.constant 9 : i32
    %76 = vector.broadcast %75 : vector<16x1xf32> to vector<16x128xf32>
    %77 = arith.cmpf olt, %20, %76 : vector<16x128xf32>
    %cst_34 = arith.constant -3.40282347E+38 : f32
    %78 = vector.broadcast %cst_34 : f32 to vector<16x128xf32>
    %79 = arith.select %77, %20, %78 : vector<16x128xi1>, vector<16x128xf32>
    %cst_35 = arith.constant dense<0xFF800000> : vector<16xf32>
    %80 = vector.multi_reduction <maximumf>, %79, %cst_35 [1] : vector<16x128xf32> to vector<16xf32>
    %81 = vector.shape_cast %80 : vector<16xf32> to vector<16x1xf32>
    %c10_i32 = arith.constant 10 : i32
    %82 = vector.broadcast %81 : vector<16x1xf32> to vector<16x128xf32>
    %83 = arith.cmpf olt, %20, %82 : vector<16x128xf32>
    %cst_36 = arith.constant -3.40282347E+38 : f32
    %84 = vector.broadcast %cst_36 : f32 to vector<16x128xf32>
    %85 = arith.select %83, %20, %84 : vector<16x128xi1>, vector<16x128xf32>
    %cst_37 = arith.constant dense<0xFF800000> : vector<16xf32>
    %86 = vector.multi_reduction <maximumf>, %85, %cst_37 [1] : vector<16x128xf32> to vector<16xf32>
    %87 = vector.shape_cast %86 : vector<16xf32> to vector<16x1xf32>
    %c11_i32 = arith.constant 11 : i32
    %88 = vector.broadcast %87 : vector<16x1xf32> to vector<16x128xf32>
    %89 = arith.cmpf olt, %20, %88 : vector<16x128xf32>
    %cst_38 = arith.constant -3.40282347E+38 : f32
    %90 = vector.broadcast %cst_38 : f32 to vector<16x128xf32>
    %91 = arith.select %89, %20, %90 : vector<16x128xi1>, vector<16x128xf32>
    %cst_39 = arith.constant dense<0xFF800000> : vector<16xf32>
    %92 = vector.multi_reduction <maximumf>, %91, %cst_39 [1] : vector<16x128xf32> to vector<16xf32>
    %93 = vector.shape_cast %92 : vector<16xf32> to vector<16x1xf32>
    %c12_i32 = arith.constant 12 : i32
    %94 = vector.broadcast %93 : vector<16x1xf32> to vector<16x128xf32>
    %95 = arith.cmpf olt, %20, %94 : vector<16x128xf32>
    %cst_40 = arith.constant -3.40282347E+38 : f32
    %96 = vector.broadcast %cst_40 : f32 to vector<16x128xf32>
    %97 = arith.select %95, %20, %96 : vector<16x128xi1>, vector<16x128xf32>
    %cst_41 = arith.constant dense<0xFF800000> : vector<16xf32>
    %98 = vector.multi_reduction <maximumf>, %97, %cst_41 [1] : vector<16x128xf32> to vector<16xf32>
    %99 = vector.shape_cast %98 : vector<16xf32> to vector<16x1xf32>
    %c13_i32 = arith.constant 13 : i32
    %100 = vector.broadcast %99 : vector<16x1xf32> to vector<16x128xf32>
    %101 = arith.cmpf olt, %20, %100 : vector<16x128xf32>
    %cst_42 = arith.constant -3.40282347E+38 : f32
    %102 = vector.broadcast %cst_42 : f32 to vector<16x128xf32>
    %103 = arith.select %101, %20, %102 : vector<16x128xi1>, vector<16x128xf32>
    %cst_43 = arith.constant dense<0xFF800000> : vector<16xf32>
    %104 = vector.multi_reduction <maximumf>, %103, %cst_43 [1] : vector<16x128xf32> to vector<16xf32>
    %105 = vector.shape_cast %104 : vector<16xf32> to vector<16x1xf32>
    %c14_i32 = arith.constant 14 : i32
    %106 = vector.broadcast %105 : vector<16x1xf32> to vector<16x128xf32>
    %107 = arith.cmpf olt, %20, %106 : vector<16x128xf32>
    %cst_44 = arith.constant -3.40282347E+38 : f32
    %108 = vector.broadcast %cst_44 : f32 to vector<16x128xf32>
    %109 = arith.select %107, %20, %108 : vector<16x128xi1>, vector<16x128xf32>
    %cst_45 = arith.constant dense<0xFF800000> : vector<16xf32>
    %110 = vector.multi_reduction <maximumf>, %109, %cst_45 [1] : vector<16x128xf32> to vector<16xf32>
    %111 = vector.shape_cast %110 : vector<16xf32> to vector<16x1xf32>
    %c15_i32 = arith.constant 15 : i32
    %112 = vector.broadcast %111 : vector<16x1xf32> to vector<16x128xf32>
    %113 = arith.cmpf olt, %20, %112 : vector<16x128xf32>
    %cst_46 = arith.constant -3.40282347E+38 : f32
    %114 = vector.broadcast %cst_46 : f32 to vector<16x128xf32>
    %115 = arith.select %113, %20, %114 : vector<16x128xi1>, vector<16x128xf32>
    %cst_47 = arith.constant dense<0xFF800000> : vector<16xf32>
    %116 = vector.multi_reduction <maximumf>, %115, %cst_47 [1] : vector<16x128xf32> to vector<16xf32>
    %117 = vector.shape_cast %116 : vector<16xf32> to vector<16x1xf32>
    %118 = vector.broadcast %117 : vector<16x1xf32> to vector<16x128xf32>
    %119 = arith.cmpf oge, %20, %118 : vector<16x128xf32>
    %120 = arith.extui %119 : vector<16x128xi1> to vector<16x128xi32>
    %121 = arith.sitofp %120 : vector<16x128xi32> to vector<16x128xf32>
    %cst_48 = arith.constant dense<0.000000e+00> : vector<128xf32>
    %122 = vector.multi_reduction <add>, %121, %cst_48 [0] : vector<16x128xf32> to vector<128xf32>
    %123 = vector.shape_cast %122 : vector<128xf32> to vector<1x128xf32>
    %124 = vector.shape_cast %123 : vector<1x128xf32> to vector<1x1x128xf32>
    %c0_49 = arith.constant 0 : index
    %c0_50 = arith.constant 0 : index
    %c0_51 = arith.constant 0 : index
    %125 = vector.load %arg11[%c0_49, %c0_50, %c0_51] : memref<1x1x128xf32, #tpu.memory_space<vmem>>, vector<1x1x128xf32>
    tpu.vector_store %arg11[%c0_49, %c0_50, %c0_51], %124 {strides = array<i32>} : memref<1x1x128xf32, #tpu.memory_space<vmem>>, vector<1x1x128xf32>,
    %cst_52 = arith.constant 0.000000e+00 : f32
    %126 = vector.broadcast %cst_52 : f32 to vector<16x1xf32>
    %127 = arith.maximumf %117, %126 : vector<16x1xf32>
    %128 = vector.broadcast %127 : vector<16x1xf32> to vector<16x128xf32>
    %129 = arith.cmpf oge, %20, %128 : vector<16x128xf32>
    %cst_53 = arith.constant 0.000000e+00 : f32
    %130 = vector.broadcast %cst_53 : f32 to vector<16x128xf32>
    %131 = arith.select %129, %20, %130 : vector<16x128xi1>, vector<16x128xf32>
    %c0_54 = arith.constant 0 : index
    %c0_55 = arith.constant 0 : index
    %132 = vector.load %arg7[%c0_54, %c0_55] : memref<128x128xf32, #tpu.memory_space<vmem>>, vector<128x128xf32>
    %cst_56 = arith.constant dense<0.000000e+00> : vector<16x128xf32>
    %133 = tpu.matmul %131, %132, %cst_56 {dimension_numbers = #tpu.dot_dimension_numbers<[1], [0], [0], [1], [0, 0, 1, 1], [], []>} : vector<16x128xf32>, vector<128x128xf32>, vector<16x128xf32> -> vector<16x128xf32>
    %c0_57 = arith.constant 0 : index
    %c0_58 = arith.constant 0 : index
    %134 = vector.load %arg8[%c0_57, %c0_58] : memref<1x128xf32, #tpu.memory_space<vmem>>, vector<1x128xf32>
    %135 = vector.broadcast %134 : vector<1x128xf32> to vector<16x128xf32>
    %136 = arith.addf %133, %135 : vector<16x128xf32>
    %cst_59 = arith.constant 5.000000e-01 : f32
    %137 = vector.broadcast %cst_59 : f32 to vector<16x128xf32>
    %138 = arith.mulf %137, %136 : vector<16x128xf32>
    %cst_60 = arith.constant 0.707106769 : f32
    %139 = vector.broadcast %cst_60 : f32 to vector<16x128xf32>
    %140 = arith.mulf %136, %139 : vector<16x128xf32>
    %141 = math.erf %140 : vector<16x128xf32>
    %cst_61 = arith.constant 1.000000e+00 : f32
    %142 = vector.broadcast %cst_61 : f32 to vector<16x128xf32>
    %143 = arith.addf %142, %141 : vector<16x128xf32>
    %144 = arith.mulf %138, %143 : vector<16x128xf32>
    %c0_62 = arith.constant 0 : index
    %c0_63 = arith.constant 0 : index
    %145 = vector.load %arg9[%c0_62, %c0_63] : memref<128x128xf32, #tpu.memory_space<vmem>>, vector<128x128xf32>
    %cst_64 = arith.constant dense<0.000000e+00> : vector<16x128xf32>
    %146 = tpu.matmul %144, %145, %cst_64 {dimension_numbers = #tpu.dot_dimension_numbers<[1], [0], [0], [1], [0, 0, 1, 1], [], []>} : vector<16x128xf32>, vector<128x128xf32>, vector<16x128xf32> -> vector<16x128xf32>
    %147 = arith.addf %146, %0 : vector<16x128xf32>
    %c0_65 = arith.constant 0 : index
    %c0_66 = arith.constant 0 : index
    %148 = vector.load %arg10[%c0_65, %c0_66] : memref<16x128xf32, #tpu.memory_space<vmem>>, vector<16x128xf32>
    tpu.vector_store %arg10[%c0_65, %c0_66], %147 {strides = array<i32>} : memref<16x128xf32, #tpu.memory_space<vmem>>, vector<16x128xf32>,
    return
  }
  func.func @transform_0(%arg0: i32) -> (i32, i32) {
    %c0_i32 = arith.constant 0 : i32
    %c0_i32_0 = arith.constant 0 : i32
    return %arg0, %c0_i32 : i32, i32
  }
  func.func @transform_1(%arg0: i32) -> (i32, i32) {
    %c0_i32 = arith.constant 0 : i32
    %c0_i32_0 = arith.constant 0 : i32
    %c0_i32_1 = arith.constant 0 : i32
    return %c0_i32, %c0_i32_0 : i32, i32
  }
  func.func @transform_2(%arg0: i32) -> (i32, i32) {
    %c0_i32 = arith.constant 0 : i32
    %c0_i32_0 = arith.constant 0 : i32
    %c0_i32_1 = arith.constant 0 : i32
    return %c0_i32, %c0_i32_0 : i32, i32
  }
  func.func @transform_3(%arg0: i32) -> (i32, i32) {
    %c0_i32 = arith.constant 0 : i32
    %c0_i32_0 = arith.constant 0 : i32
    %c0_i32_1 = arith.constant 0 : i32
    return %c0_i32, %c0_i32_0 : i32, i32
  }
  func.func @transform_4(%arg0: i32) -> (i32, i32) {
    %c0_i32 = arith.constant 0 : i32
    %c0_i32_0 = arith.constant 0 : i32
    %c0_i32_1 = arith.constant 0 : i32
    return %c0_i32, %c0_i32_0 : i32, i32
  }
  func.func @transform_5(%arg0: i32) -> (i32, i32) {
    %c0_i32 = arith.constant 0 : i32
    %c0_i32_0 = arith.constant 0 : i32
    %c0_i32_1 = arith.constant 0 : i32
    return %c0_i32, %c0_i32_0 : i32, i32
  }
  func.func @transform_6(%arg0: i32) -> (i32, i32) {
    %c0_i32 = arith.constant 0 : i32
    %c0_i32_0 = arith.constant 0 : i32
    %c0_i32_1 = arith.constant 0 : i32
    return %c0_i32, %c0_i32_0 : i32, i32
  }
  func.func @transform_7(%arg0: i32) -> (i32, i32) {
    %c0_i32 = arith.constant 0 : i32
    %c0_i32_0 = arith.constant 0 : i32
    %c0_i32_1 = arith.constant 0 : i32
    return %c0_i32, %c0_i32_0 : i32, i32
  }
  func.func @transform_8(%arg0: i32) -> (i32, i32) {
    %c0_i32 = arith.constant 0 : i32
    %c0_i32_0 = arith.constant 0 : i32
    %c0_i32_1 = arith.constant 0 : i32
    return %c0_i32, %c0_i32_0 : i32, i32
  }
  func.func @transform_9(%arg0: i32) -> (i32, i32) {
    %c0_i32 = arith.constant 0 : i32
    %c0_i32_0 = arith.constant 0 : i32
    return %arg0, %c0_i32 : i32, i32
  }
  func.func @transform_10(%arg0: i32) -> (i32, i32, i32) {
    %c0_i32 = arith.constant 0 : i32
    %c0_i32_0 = arith.constant 0 : i32
    %c0_i32_1 = arith.constant 0 : i32
    return %arg0, %c0_i32, %c0_i32_0 : i32, i32, i32
  }
}

</mosaic_0001>

<bundles_post_ra>
// kernel: tpu_custom_call.1
= control target key start
LH: loop header
LB: loop body
LE: loop exit
PB: predicated region body
PF: predicated region fallthrough
CT: control target
= control target key end

     0   :  { %16 = vsyncpa [#allocation3], 0  ;;  %s1558_s0 = inlined_call_operand.hbm [shape: f32[16,128], index: 0, kind: input, shape index: {}]   ;;  %s1559_s1 = inlined_call_operand.hbm [shape: f32[16,128], index: 1, kind: input, shape index: {}]   ;;  %s1560_s2 = inlined_call_operand.hbm [shape: f32[128,128], index: 2, kind: input, shape index: {}]   ;;  %s1561_s3 = inlined_call_operand.vmem [shape: f32[1,128], index: 3, kind: input, shape index: {}]   ;;  %s1562_s4 = inlined_call_operand.hbm [shape: f32[128,128], index: 4, kind: input, shape index: {}]   ;;  %s1563_s5 = inlined_call_operand.vmem [shape: f32[1,128], index: 5, kind: input, shape index: {}]   ;;  %s1564_s6 = inlined_call_operand.hbm [shape: f32[128,128], index: 6, kind: input, shape index: {}]   ;;  %s1565_s7 = inlined_call_operand.vmem [shape: f32[1,128], index: 7, kind: input, shape index: {}]   ;;  %s1566_s8 = inlined_call_operand.hbm [shape: f32[128,128], index: 8, kind: input, shape index: {}]   ;;  %s1567_s9 = inlined_call_operand.hbm [shape: f32[16,128], index: 9, kind: output, shape index: {0}]   ;;  %s1568_s10 = inlined_call_operand.hbm [shape: f32[1,1,128], index: 10, kind: output, shape index: {1}]  }
   0x1   :  { %17 = vsyncpa [#allocation6], 0 }
   0x2   :  { %18 = vsyncpa [#allocation9], 0 }
   0x3   :  { %19 = vsyncpa [#allocation12], 0 }
   0x4   :  { %20 = vsyncpa [#allocation4], 0 }
   0x5   :  { %21 = vsyncpa [#allocation15], 0  ;;  %s1267_s13 = smov [#allocation5]   ;;  %s1268_s15 = smov [#allocation8]  }
   0x6   :  { %s39_s14 = sshll.u32 %s1267_s13, 4  ;;  %s65_s16 = sshll.u32 %s1268_s15, 4  ;;  %s40_s14 = int_to_ptr.vmem [resolvable:$true] %s39_s14  ;;  %s1333_s16 = int_to_ptr.vmem [resolvable:$true] %s65_s16 }
   0x7   :  { %s1079_s19 = scalar_lea.hbm %s1559_s1, 256 }
   0x8   :  { %p1080_p0 = scmp.ne.s32.totalorder %s1559_s1, %s1079_s19  ;;  %p1083_p1 = scmp.lt.u32.totalorder %s1079_s19, %s1559_s1 }
   0xa   :  { %p1085_p2 = pnand %p1083_p1, %p1080_p0 }
   0xc   :  { %1088 = shalt.err (!%p1085_p2)
}
   0xd   :  { %s1089_s24 = scalar_lea.vmem %s40_s14, 256  ;;  %p1094_p4 = scmp.lt.s32.totalorder %s40_s14, %s40_s14 }
   0xe   :  { %p1090_p3 = scmp.ne.s32.totalorder %s40_s14, %s1089_s24  ;;  %p1095_p5 = scmp.lt.s32.totalorder %s1089_s24, %s1089_s24 }
  0x10   :  { %p1096_p6 = por %p1095_p5, %p1094_p4 }
  0x12   :  { %p1097_p7 = pnand %p1096_p6, %p1090_p3 }
  0x14   :  { %1100 = shalt.err (!%p1097_p7)
}
  0x15   :  { %s1269_s25 = smov 128   ;;  %s1270_s26 = smov 8  }
  0x16   :  { %45 = dma.hbm_to_vmem [thread:$0]  %s1559_s1, 256, %s40_s14, [#allocation6], %s1269_s25, %s1269_s25, %s1270_s26  }
  0x17   :  { %s1101_s11 = scalar_lea.hbm %s1562_s4, 2048 }
  0x18   :  { %p1102_p8 = scmp.ne.s32.totalorder %s1562_s4, %s1101_s11  ;;  %p1105_p9 = scmp.lt.u32.totalorder %s1101_s11, %s1562_s4 }
  0x1a   :  { %p1107_p10 = pnand %p1105_p9, %p1102_p8 }
  0x1c   :  { %1110 = shalt.err (!%p1107_p10)
}
  0x1d   :  { %s1111_s18 = scalar_lea.vmem %s1333_s16, 2048  ;;  %p1116_p12 = scmp.lt.s32.totalorder %s1333_s16, %s1333_s16 }
  0x1e   :  { %p1112_p11 = scmp.ne.s32.totalorder %s1333_s16, %s1111_s18  ;;  %p1117_p13 = scmp.lt.s32.totalorder %s1111_s18, %s1111_s18 }
  0x20   :  { %p1118_p0 = por %p1117_p13, %p1116_p12 }
  0x22   :  { %p1119_p1 = pnand %p1118_p0, %p1112_p11 }
  0x24   :  { %1122 = shalt.err (!%p1119_p1)
}
  0x25   :  { %71 = dma.hbm_to_vmem [thread:$0]  %s1562_s4, 2048, %s1333_s16, [#allocation9], %s1269_s25, %s1269_s25, %s1270_s26  }
  0x26   :  { %s1271_s19 = smov [#allocation2]   ;;  %s1272_s21 = smov [#allocation7]  }
  0x27   :  { %s27_s20 = sshll.u32 %s1271_s19, 4  ;;  %s51_s22 = sshll.u32 %s1272_s21, 4  ;;  %s28_s20 = int_to_ptr.vmem [resolvable:$true] %s27_s20  ;;  %s1370_s22 = int_to_ptr.vmem [resolvable:$true] %s51_s22 }
  0x28   :  { %s1123_s27 = scalar_lea.hbm %s1558_s0, 256 }
  0x29   :  { %p1124_p2 = scmp.ne.s32.totalorder %s1558_s0, %s1123_s27  ;;  %p1127_p3 = scmp.lt.u32.totalorder %s1123_s27, %s1558_s0 }
  0x2b   :  { %p1129_p4 = pnand %p1127_p3, %p1124_p2 }
  0x2d   :  { %1132 = shalt.err (!%p1129_p4)
}
  0x2e   :  { %s1133_s4 = scalar_lea.vmem %s28_s20, 256  ;;  %p1138_p6 = scmp.lt.s32.totalorder %s28_s20, %s28_s20 }
  0x2f   :  { %p1134_p5 = scmp.ne.s32.totalorder %s28_s20, %s1133_s4  ;;  %p1139_p7 = scmp.lt.s32.totalorder %s1133_s4, %s1133_s4 }
  0x31   :  { %p1140_p8 = por %p1139_p7, %p1138_p6 }
  0x33   :  { %p1141_p9 = pnand %p1140_p8, %p1134_p5 }
  0x35   :  { %1144 = shalt.err (!%p1141_p9)
}
  0x36   :  { %33 = dma.hbm_to_vmem [thread:$0]  %s1558_s0, 256, %s28_s20, [#allocation3], %s1269_s25, %s1269_s25, %s1270_s26  }
  0x37   :  { %s1145_s17 = scalar_lea.hbm %s1560_s2, 2048 }
  0x38   :  { %p1146_p10 = scmp.ne.s32.totalorder %s1560_s2, %s1145_s17  ;;  %p1149_p11 = scmp.lt.u32.totalorder %s1145_s17, %s1560_s2 }
  0x3a   :  { %p1151_p12 = pnand %p1149_p11, %p1146_p10 }
  0x3c   :  { %1154 = shalt.err (!%p1151_p12)
}
  0x3d   :  { %s1155_s21 = scalar_lea.vmem %s1370_s22, 2048  ;;  %p1160_p0 = scmp.lt.s32.totalorder %s1370_s22, %s1370_s22 }
  0x3e   :  { %p1156_p13 = scmp.ne.s32.totalorder %s1370_s22, %s1155_s21  ;;  %p1161_p1 = scmp.lt.s32.totalorder %s1155_s21, %s1155_s21 }
  0x40   :  { %p1162_p2 = por %p1161_p1, %p1160_p0 }
  0x42   :  { %p1163_p3 = pnand %p1162_p2, %p1156_p13 }
  0x44   :  { %1166 = shalt.err (!%p1163_p3)
}
  0x45   :  { %57 = dma.hbm_to_vmem [thread:$0]  %s1560_s2, 2048, %s1370_s22, [#allocation6], %s1269_s25, %s1269_s25, %s1270_s26  }
  0x46   :  { %s1273_s23 = smov [#allocation10]   ;;  %s1274_s27 = smov [#allocation11]  }
  0x47   :  { %s79_s24 = sshll.u32 %s1273_s23, 4  ;;  %s93_s28 = sshll.u32 %s1274_s27, 4  ;;  %s80_s24 = int_to_ptr.vmem [resolvable:$true] %s79_s24  ;;  %s1407_s28 = int_to_ptr.vmem [resolvable:$true] %s93_s28 }
  0x48   :  { %s1167_s11 = scalar_lea.hbm %s1564_s6, 2048 }
  0x49   :  { %p1168_p4 = scmp.ne.s32.totalorder %s1564_s6, %s1167_s11  ;;  %p1171_p5 = scmp.lt.u32.totalorder %s1167_s11, %s1564_s6 }
  0x4b   :  { %p1173_p6 = pnand %p1171_p5, %p1168_p4 }
  0x4d   :  { %1176 = shalt.err (!%p1173_p6)
}
  0x4e   :  { %s1177_s2 = scalar_lea.vmem %s80_s24, 2048  ;;  %p1182_p8 = scmp.lt.s32.totalorder %s80_s24, %s80_s24 }
  0x4f   :  { %p1178_p7 = scmp.ne.s32.totalorder %s80_s24, %s1177_s2  ;;  %p1183_p9 = scmp.lt.s32.totalorder %s1177_s2, %s1177_s2 }
  0x51   :  { %p1184_p10 = por %p1183_p9, %p1182_p8 }
  0x53   :  { %p1185_p11 = pnand %p1184_p10, %p1178_p7 }
  0x55   :  { %1188 = shalt.err (!%p1185_p11)
}
  0x56   :  { %85 = dma.hbm_to_vmem [thread:$0]  %s1564_s6, 2048, %s80_s24, [#allocation9], %s1269_s25, %s1269_s25, %s1270_s26  }
  0x57   :  { %s1189_s1 = scalar_lea.hbm %s1566_s8, 2048 }
  0x58   :  { %p1190_p12 = scmp.ne.s32.totalorder %s1566_s8, %s1189_s1  ;;  %p1193_p13 = scmp.lt.u32.totalorder %s1189_s1, %s1566_s8 }
  0x5a   :  { %p1195_p0 = pnand %p1193_p13, %p1190_p12 }
  0x5c   :  { %1198 = shalt.err (!%p1195_p0)
}
  0x5d   :  { %s1199_s20 = scalar_lea.vmem %s1407_s28, 2048  ;;  %p1204_p2 = scmp.lt.s32.totalorder %s1407_s28, %s1407_s28 }
  0x5e   :  { %p1200_p1 = scmp.ne.s32.totalorder %s1407_s28, %s1199_s20  ;;  %p1205_p3 = scmp.lt.s32.totalorder %s1199_s20, %s1199_s20 }
  0x60   :  { %p1206_p4 = por %p1205_p3, %p1204_p2 }
  0x62   :  { %p1207_p5 = pnand %p1206_p4, %p1200_p1 }
  0x64   :  { %1210 = shalt.err (!%p1207_p5)
}
  0x65   :  { %99 = dma.hbm_to_vmem [thread:$0]  %s1566_s8, 2048, %s1407_s28, [#allocation12], %s1269_s25, %s1269_s25, %s1270_s26  }
  0x66   :  { %1255 = dma.done.wait [#allocation3], 256  }
  0x67   :  { %1256 = vsyncadd [#allocation3], 4294967040 }
  0x68   :  { %1257 = dma.done.wait [#allocation6], 2304  }
  0x69   :  { %1258 = vsyncadd [#allocation6], 4294964992 }
  0x6a   :  { %1259 = dma.done.wait [#allocation9], 4096  }
  0x6b   :  { %1260 = vsyncadd [#allocation9], 4294963200 }
  0x6c   :  { %1261 = dma.done.wait [#allocation12], 2048  }
  0x6d   :  { %1262 = vsyncadd [#allocation12], 4294965248  ;;  %v124_v0 = vld [vmem:[#allocation7] sm:$0xff]  ;;  %v125_v1 = vld [vmem:[#allocation7 + $0x8] sm:$0xff] }
  0x6e   :  { %v126_v2 = vld [vmem:[#allocation7 + $0x10] sm:$0xff]  ;;  %v932_v3 = vpack.c.bf16 %v125_v1, %v124_v0  ;;  %v127_v4 = vld [vmem:[#allocation7 + $0x18] sm:$0xff]  ;;  %v128_v6 = vld [vmem:[#allocation7 + $0x20] sm:$0xff] }
  0x6f   :  { %v936_v5 = vpack.c.bf16 %v127_v4, %v126_v2  ;;  %v129_v7 = vld [vmem:[#allocation7 + $0x28] sm:$0xff]  ;;  %v130_v9 = vld [vmem:[#allocation7 + $0x30] sm:$0xff]  ;;  %v131_v10 = vld [vmem:[#allocation7 + $0x38] sm:$0xff] }
  0x70   :  { %933 = vmatprep.subr.bf16.mxu0 %v932_v3  ;;  %v940_v8 = vpack.c.bf16 %v129_v7, %v128_v6  ;;  %v232_v11 = vld [vmem:[#allocation8] sm:$0xff]  ;;  %v233_v12 = vld [vmem:[#allocation8 + $0x8] sm:$0xff]  ;;  %v234_v13 = vld [vmem:[#allocation8 + $0x10] sm:$0xff]  ;;  %v944_v19 = vpack.c.bf16 %v131_v10, %v130_v9 }
  0x71   :  { %935 = vmatpush3.bf16.msra.mxu0 %v932_v3  ;;  %v964_v14 = vpack.c.bf16 %v233_v12, %v232_v11  ;;  %v235_v15 = vld [vmem:[#allocation8 + $0x18] sm:$0xff]  ;;  %v236_v17 = vld [vmem:[#allocation8 + $0x20] sm:$0xff]  ;;  %v237_v18 = vld [vmem:[#allocation8 + $0x28] sm:$0xff] }
  0x72   :  { %937 = vmatprep.subr.bf16.mxu0 %v936_v5  ;;  %v968_v16 = vpack.c.bf16 %v235_v15, %v234_v13  ;;  %v132_v20 = vld [vmem:[#allocation7 + $0x40] sm:$0xff]  ;;  %v133_v21 = vld [vmem:[#allocation7 + $0x48] sm:$0xff]  ;;  %v972_v22 = vpack.c.bf16 %v237_v18, %v236_v17  ;;  %v134_v24 = vld [vmem:[#allocation7 + $0x50] sm:$0xff] }
  0x73   :  { %965 = vmatprep.subr.bf16.mxu1 %v964_v14  ;;  %v948_v23 = vpack.c.bf16 %v133_v21, %v132_v20  ;;  %v135_v25 = vld [vmem:[#allocation7 + $0x58] sm:$0xff]  ;;  %v136_v27 = vld [vmem:[#allocation7 + $0x60] sm:$0xff]  ;;  %v137_v28 = vld [vmem:[#allocation7 + $0x68] sm:$0xff] }
  0x74   :  { %967 = vmatpush3.bf16.msra.mxu1 %v964_v14  ;;  %v952_v26 = vpack.c.bf16 %v135_v25, %v134_v24  ;;  %v956_v29 = vpack.c.bf16 %v137_v28, %v136_v27  ;;  %v138_v30 = vld [vmem:[#allocation7 + $0x70] sm:$0xff]  ;;  %v139_v31 = vld [vmem:[#allocation7 + $0x78] sm:$0xff]  ;;  %v121_v34 = vld [vmem:[#allocation2 + $0x8] sm:$0xff] }
  0x75   :  { %939 = vmatpush3.bf16.msra.mxu0 %v936_v5  ;;  %969 = vmatprep.subr.bf16.mxu1 %v968_v16  ;;  %v960_v32 = vpack.c.bf16 %v139_v31, %v138_v30  ;;  %v1444_v33 = vld [vmem:[#allocation5 + $0x8] sm:$0xff]  ;;  %v238_v36 = vld [vmem:[#allocation8 + $0x30] sm:$0xff]  ;;  %v240_v39 = vld [vmem:[#allocation8 + $0x40] sm:$0xff] }
  0x76   :  { %941 = vmatprep.subr.bf16.mxu0 %v940_v8  ;;  %v123_v35 = vsub.f32 %v121_v34, %v1444_v33  ;;  %v239_v37 = vld [vmem:[#allocation8 + $0x38] sm:$0xff]  ;;  %v241_v40 = vld [vmem:[#allocation8 + $0x48] sm:$0xff]  ;;  %v242_v42 = vld [vmem:[#allocation8 + $0x50] sm:$0xff] }
  0x77   :  { %v976_v38 = vpack.c.bf16 %v239_v37, %v238_v36  ;;  %v980_v41 = vpack.c.bf16 %v241_v40, %v240_v39  ;;  %v243_v43 = vld [vmem:[#allocation8 + $0x58] sm:$0xff]  ;;  %v244_v45 = vld [vmem:[#allocation8 + $0x60] sm:$0xff]  ;;  %v245_v46 = vld [vmem:[#allocation8 + $0x68] sm:$0xff] }
  0x78   :  { %971 = vmatpush3.bf16.msra.mxu1 %v968_v16  ;;  %v984_v44 = vpack.c.bf16 %v243_v43, %v242_v42  ;;  %v988_v47 = vpack.c.bf16 %v245_v46, %v244_v45  ;;  %v246_v48 = vld [vmem:[#allocation8 + $0x70] sm:$0xff]  ;;  %v247_v49 = vld [vmem:[#allocation8 + $0x78] sm:$0xff]  ;;  %v713_v51 = vld [vmem:[%s1561_s3] ss:$0 sm:$0xff] }
  0x79   :  { %943 = vmatpush3.bf16.msra.mxu0 %v940_v8  ;;  %973 = vmatprep.subr.bf16.mxu1 %v972_v22  ;;  %v992_v50 = vpack.c.bf16 %v247_v49, %v246_v48  ;;  %v714_v2 = vld [vmem:[%s1563_s5] ss:$0 sm:$0xff] }
  0x7a   :  { %945 = vmatprep.subr.bf16.mxu0 %v944_v19 }
  0x7c   :  { %975 = vmatpush3.bf16.msra.mxu1 %v972_v22 }
  0x7d   :  { %947 = vmatpush3.bf16.msra.mxu0 %v944_v19  ;;  %977 = vmatprep.subr.bf16.mxu1 %v976_v38 }
  0x7e   :  { %949 = vmatprep.subr.bf16.mxu0 %v948_v23 }
  0x80   :  { %979 = vmatpush3.bf16.msra.mxu1 %v976_v38 }
  0x81   :  { %951 = vmatpush3.bf16.msra.mxu0 %v948_v23  ;;  %981 = vmatprep.subr.bf16.mxu1 %v980_v41 }
  0x82   :  { %953 = vmatprep.subr.bf16.mxu0 %v952_v26 }
  0x84   :  { %983 = vmatpush3.bf16.msra.mxu1 %v980_v41 }
  0x85   :  { %955 = vmatpush3.bf16.msra.mxu0 %v952_v26  ;;  %985 = vmatprep.subr.bf16.mxu1 %v984_v44 }
  0x86   :  { %957 = vmatprep.subr.bf16.mxu0 %v956_v29 }
  0x88   :  { %987 = vmatpush3.bf16.msra.mxu1 %v984_v44 }
  0x89   :  { %959 = vmatpush3.bf16.msra.mxu0 %v956_v29  ;;  %989 = vmatprep.subr.bf16.mxu1 %v988_v47 }
  0x8a   :  { %961 = vmatprep.subr.bf16.mxu0 %v960_v32 }
  0x8c   :  { %991 = vmatpush3.bf16.msra.mxu1 %v988_v47 }
  0x8d   :  { %963 = vmatpush3.bf16.msra.mxu0 %v960_v32  ;;  %993 = vmatprep.subr.bf16.mxu1 %v992_v50 }
  0x90   :  { %825 = vmatmul.mubr.f32.vlgmr.msra.gmra.mrb[0].mxu0 %v123_v35  ;;  %995 = vmatpush3.bf16.msra.mxu1 %v992_v50 }
 0x163   :  { %v826_v52 = vpop.f32.mrb[0].mxu0 }
 0x164   :  { %v219_v53 = vadd.f32 %v826_v52, %v713_v51  ;;  %v213_v54 = vpop.f32.mrb[1].mxu0 }
 0x165   :  { %v214_v55 = vadd.f32 %v713_v51, %v213_v54 }
 0x166   :  { %v225_v56 = vmul.f32 0.70710677, %v219_v53  ;;  %v223_v63 = vmul.f32 0.5, %v219_v53 }
 0x167   :  { %v224_v57 = vmul.f32 0.70710677, %v214_v55  ;;  %v222_v61 = vmul.f32 0.5, %v214_v55 }
 0x168   :  { %1071 = verf.f32 %v225_v56 }
 0x169   :  { %1073 = verf.f32 %v224_v57 }
 0x172   :  { %v1072_v58 = vpop.eup %1071 }
 0x173   :  { %v1074_v59 = vpop.eup %1073  ;;  %v229_v60 = vadd.f32 1.0, %v1072_v58 }
 0x174   :  { %v228_v62 = vadd.f32 1.0, %v1074_v59 }
 0x175   :  { %v231_v1 = vmul.f32 %v229_v60, %v223_v63 }
 0x176   :  { %v230_v0 = vmul.f32 %v228_v62, %v222_v61 }
 0x178   :  { %859 = vmatprep.mubr.f32.mxu1 %v230_v0 }
 0x179   :  { %860 = vmatmul.mubr.f32.vlgmr.msra.gmra.mrb[0].mxu1 %v231_v1 }
 0x24c   :  { %v861_v3 = vpop.f32.mrb[0].mxu1 }
 0x24d   :  { %v321_v4 = vpop.f32.mrb[1].mxu1  ;;  %v1453_v5 = vadd.f32 %v861_v3, %v714_v2  ;;  %v479_v3 = vld [vmem:[#allocation10 + $0x8] sm:$0xff] }
 0x24e   :  { %v1455_v6 = vadd.f32 %v714_v2, %v321_v4  ;;  %v478_v2 = vld [vmem:[#allocation10] sm:$0xff]  ;;  %v480_v4 = vld [vmem:[#allocation10 + $0x10] sm:$0xff] }
 0x24f   :  { %vm331_vm1 = vcmp.lt.f32.partialorder %v1453_v5, inf }
 0x250   :  { %vm330_vm0 = vcmp.lt.f32.partialorder %v1455_v6, inf  ;;  %v333_v8 = vsel %vm331_vm1, %v1453_v5, -3.4028235e+38 }
 0x251   :  { %v332_v7 = vsel %vm330_vm0, %v1455_v6, -3.4028235e+38 }
 0x252   :  { %334 = vmax.xlane.f32.xlu0 %v332_v7  ;;  %v996_v7 = vpack.c.bf16 %v479_v3, %v478_v2  ;;  %v600_v2 = vld [vmem:[#allocation11 + $0x70] sm:$0xff]  ;;  %v601_v3 = vld [vmem:[#allocation11 + $0x78] sm:$0xff] }
 0x254   :  { %997 = vmatprep.subr.bf16.mxu0 %v996_v7 }
 0x255   :  { %999 = vmatpush3.bf16.msra.mxu0 %v996_v7  ;;  %v717_v7 = vld [vmem:[%s1565_s7] ss:$0 sm:$0xff]  ;;  %s1276_s7 = smov [#allocation14]  }
 0x256   :  { %336 = vmax.xlane.f32.xlu0 %v333_v8  ;;  %v481_v8 = vld [vmem:[#allocation10 + $0x18] sm:$0xff]  ;;  %s697_s29 = sshll.u32 %s1276_s7, 4  ;;  %s698_s29 = int_to_ptr.vmem [resolvable:$true] %s697_s29 }
 0x257   :  { %s1211_s30 = scalar_lea.vmem %s698_s29, 16  ;;  %s1215_s11 = scalar_lea.vmem %s698_s29, 32 }
 0x258   :  { %p1212_p6 = scmp.ne.s32.totalorder %s698_s29, %s1211_s30  ;;  %p1216_p7 = scmp.lt.s32.totalorder %s698_s29, %s698_s29 }
 0x259   :  { %p1217_p8 = scmp.lt.s32.totalorder %s1215_s11, %s1211_s30 }
 0x25b   :  { %p1218_p9 = por %p1217_p8, %p1216_p7 }
 0x25d   :  { %p1219_p10 = pnand %p1218_p9, %p1212_p6 }
 0x2df   :  { %v335_v9 = vpop.xlane.xlu0 %334 }
 0x2e0   :  { %vm338_vm2 = vcmp.lt.f32.partialorder %v1455_v6, %v335_v9  ;;  %v1000_v9 = vpack.c.bf16 %v481_v8, %v480_v4  ;;  %v1056_v4 = vpack.c.bf16 %v601_v3, %v600_v2 }
 0x2e1   :  { %v340_v10 = vsel %vm338_vm2, %v1455_v6, -3.4028235e+38 }
 0x2e2   :  { %342 = vmax.xlane.f32.xlu1 %v340_v10  ;;  %v482_v10 = vld [vmem:[#allocation10 + $0x20] sm:$0xff]  ;;  %1001 = vmatprep.subr.bf16.mxu0 %v1000_v9 }
 0x2e3   :  { %v337_v11 = vpop.xlane.xlu0 %336  ;;  %1003 = vmatpush3.bf16.msra.mxu0 %v1000_v9 }
 0x2e4   :  { %vm339_vm3 = vcmp.lt.f32.partialorder %v1453_v5, %v337_v11  ;;  %v483_v11 = vld [vmem:[#allocation10 + $0x28] sm:$0xff] }
 0x2e5   :  { %v341_v12 = vsel %vm339_vm3, %v1453_v5, -3.4028235e+38 }
 0x2e6   :  { %344 = vmax.xlane.f32.xlu1 %v341_v12  ;;  %v1004_v12 = vpack.c.bf16 %v483_v11, %v482_v10 }
 0x2e8   :  { %1005 = vmatprep.subr.bf16.mxu0 %v1004_v12 }
 0x2e9   :  { %1007 = vmatpush3.bf16.msra.mxu0 %v1004_v12 }
 0x36f   :  { %v343_v13 = vpop.xlane.xlu1 %342 }
 0x370   :  { %vm346_vm4 = vcmp.lt.f32.partialorder %v1455_v6, %v343_v13  ;;  %v484_v13 = vld [vmem:[#allocation10 + $0x30] sm:$0xff] }
 0x371   :  { %v348_v14 = vsel %vm346_vm4, %v1455_v6, -3.4028235e+38 }
 0x372   :  { %350 = vmax.xlane.f32.xlu0 %v348_v14  ;;  %v485_v14 = vld [vmem:[#allocation10 + $0x38] sm:$0xff] }
 0x373   :  { %v345_v15 = vpop.xlane.xlu1 %344 }
 0x374   :  { %vm347_vm5 = vcmp.lt.f32.partialorder %v1453_v5, %v345_v15  ;;  %v1008_v15 = vpack.c.bf16 %v485_v14, %v484_v13 }
 0x375   :  { %v349_v16 = vsel %vm347_vm5, %v1453_v5, -3.4028235e+38 }
 0x376   :  { %352 = vmax.xlane.f32.xlu1 %v349_v16  ;;  %v486_v16 = vld [vmem:[#allocation10 + $0x40] sm:$0xff]  ;;  %1009 = vmatprep.subr.bf16.mxu0 %v1008_v15 }
 0x377   :  { %1011 = vmatpush3.bf16.msra.mxu0 %v1008_v15 }
 0x3ff   :  { %v351_v17 = vpop.xlane.xlu0 %350 }
 0x400   :  { %vm354_vm6 = vcmp.lt.f32.partialorder %v1455_v6, %v351_v17  ;;  %v487_v17 = vld [vmem:[#allocation10 + $0x48] sm:$0xff] }
 0x401   :  { %v356_v18 = vsel %vm354_vm6, %v1455_v6, -3.4028235e+38 }
 0x402   :  { %358 = vmax.xlane.f32.xlu0 %v356_v18  ;;  %v1012_v18 = vpack.c.bf16 %v487_v17, %v486_v16 }
 0x403   :  { %v353_v19 = vpop.xlane.xlu1 %352 }
 0x404   :  { %vm355_vm7 = vcmp.lt.f32.partialorder %v1453_v5, %v353_v19  ;;  %v488_v19 = vld [vmem:[#allocation10 + $0x50] sm:$0xff]  ;;  %1013 = vmatprep.subr.bf16.mxu0 %v1012_v18 }
 0x405   :  { %v357_v20 = vsel %vm355_vm7, %v1453_v5, -3.4028235e+38  ;;  %1015 = vmatpush3.bf16.msra.mxu0 %v1012_v18 }
 0x406   :  { %360 = vmax.xlane.f32.xlu1 %v357_v20  ;;  %v489_v20 = vld [vmem:[#allocation10 + $0x58] sm:$0xff] }
 0x48f   :  { %v359_v21 = vpop.xlane.xlu0 %358 }
 0x490   :  { %vm362_vm8 = vcmp.lt.f32.partialorder %v1455_v6, %v359_v21  ;;  %v1016_v21 = vpack.c.bf16 %v489_v20, %v488_v19 }
 0x491   :  { %v364_v22 = vsel %vm362_vm8, %v1455_v6, -3.4028235e+38 }
 0x492   :  { %366 = vmax.xlane.f32.xlu0 %v364_v22  ;;  %v490_v22 = vld [vmem:[#allocation10 + $0x60] sm:$0xff]  ;;  %1017 = vmatprep.subr.bf16.mxu0 %v1016_v21 }
 0x493   :  { %v361_v23 = vpop.xlane.xlu1 %360  ;;  %1019 = vmatpush3.bf16.msra.mxu0 %v1016_v21 }
 0x494   :  { %vm363_vm9 = vcmp.lt.f32.partialorder %v1453_v5, %v361_v23  ;;  %v491_v23 = vld [vmem:[#allocation10 + $0x68] sm:$0xff] }
 0x495   :  { %v365_v24 = vsel %vm363_vm9, %v1453_v5, -3.4028235e+38 }
 0x496   :  { %368 = vmax.xlane.f32.xlu1 %v365_v24  ;;  %v1020_v24 = vpack.c.bf16 %v491_v23, %v490_v22  ;;  %v118_v22 = vld [vmem:[#allocation5] sm:$0xff]  ;;  %v120_v23 = vld [vmem:[#allocation2] sm:$0xff] }
 0x498   :  { %1021 = vmatprep.subr.bf16.mxu0 %v1020_v24 }
 0x499   :  { %1023 = vmatpush3.bf16.msra.mxu0 %v1020_v24  ;;  %v122_v24 = vsub.f32 %v120_v23, %v118_v22 }
 0x51f   :  { %v367_v25 = vpop.xlane.xlu0 %366 }
 0x520   :  { %vm370_vm10 = vcmp.lt.f32.partialorder %v1455_v6, %v367_v25 }
 0x521   :  { %v372_v26 = vsel %vm370_vm10, %v1455_v6, -3.4028235e+38 }
 0x522   :  { %374 = vmax.xlane.f32.xlu0 %v372_v26 }
 0x523   :  { %v369_v27 = vpop.xlane.xlu1 %368 }
 0x524   :  { %vm371_vm11 = vcmp.lt.f32.partialorder %v1453_v5, %v369_v27 }
 0x525   :  { %v373_v28 = vsel %vm371_vm11, %v1453_v5, -3.4028235e+38 }
 0x526   :  { %376 = vmax.xlane.f32.xlu1 %v373_v28 }
 0x5af   :  { %v375_v29 = vpop.xlane.xlu0 %374 }
 0x5b0   :  { %vm378_vm12 = vcmp.lt.f32.partialorder %v1455_v6, %v375_v29  ;;  %v492_v29 = vld [vmem:[#allocation10 + $0x70] sm:$0xff] }
 0x5b1   :  { %v380_v30 = vsel %vm378_vm12, %v1455_v6, -3.4028235e+38 }
 0x5b2   :  { %382 = vmax.xlane.f32.xlu0 %v380_v30  ;;  %v493_v30 = vld [vmem:[#allocation10 + $0x78] sm:$0xff] }
 0x5b3   :  { %v377_v31 = vpop.xlane.xlu1 %376 }
 0x5b4   :  { %vm379_vm13 = vcmp.lt.f32.partialorder %v1453_v5, %v377_v31  ;;  %v1024_v31 = vpack.c.bf16 %v493_v30, %v492_v29 }
 0x5b5   :  { %v381_v32 = vsel %vm379_vm13, %v1453_v5, -3.4028235e+38 }
 0x5b6   :  { %384 = vmax.xlane.f32.xlu1 %v381_v32  ;;  %1025 = vmatprep.subr.bf16.mxu0 %v1024_v31  ;;  %v586_v32 = vld [vmem:[#allocation11] sm:$0xff] }
 0x5b7   :  { %1027 = vmatpush3.bf16.msra.mxu0 %v1024_v31 }
 0x63f   :  { %v383_v34 = vpop.xlane.xlu0 %382 }
 0x640   :  { %vm386_vm14 = vcmp.lt.f32.partialorder %v1455_v6, %v383_v34  ;;  %v587_v34 = vld [vmem:[#allocation11 + $0x8] sm:$0xff] }
 0x641   :  { %v388_v35 = vsel %vm386_vm14, %v1455_v6, -3.4028235e+38 }
 0x642   :  { %390 = vmax.xlane.f32.xlu0 %v388_v35  ;;  %v588_v35 = vld [vmem:[#allocation11 + $0x10] sm:$0xff] }
 0x643   :  { %v385_v36 = vpop.xlane.xlu1 %384 }
 0x644   :  { %vm387_vm15 = vcmp.lt.f32.partialorder %v1453_v5, %v385_v36  ;;  %v1028_v36 = vpack.c.bf16 %v587_v34, %v586_v32 }
 0x645   :  { %v389_v37 = vsel %vm387_vm15, %v1453_v5, -3.4028235e+38 }
 0x646   :  { %392 = vmax.xlane.f32.xlu1 %v389_v37  ;;  %v589_v37 = vld [vmem:[#allocation11 + $0x18] sm:$0xff]  ;;  %1029 = vmatprep.subr.bf16.mxu1 %v1028_v36 }
 0x647   :  { %1031 = vmatpush3.bf16.msra.mxu1 %v1028_v36 }
 0x6cf   :  { %v391_v38 = vpop.xlane.xlu0 %390 }
 0x6d0   :  { %vm394_vm0 = vcmp.lt.f32.partialorder %v1455_v6, %v391_v38  ;;  %v1032_v38 = vpack.c.bf16 %v589_v37, %v588_v35 }
 0x6d1   :  { %v396_v39 = vsel %vm394_vm0, %v1455_v6, -3.4028235e+38 }
 0x6d2   :  { %398 = vmax.xlane.f32.xlu0 %v396_v39  ;;  %v590_v39 = vld [vmem:[#allocation11 + $0x20] sm:$0xff]  ;;  %1033 = vmatprep.subr.bf16.mxu1 %v1032_v38 }
 0x6d3   :  { %v393_v40 = vpop.xlane.xlu1 %392  ;;  %1035 = vmatpush3.bf16.msra.mxu1 %v1032_v38 }
 0x6d4   :  { %vm395_vm1 = vcmp.lt.f32.partialorder %v1453_v5, %v393_v40  ;;  %v591_v40 = vld [vmem:[#allocation11 + $0x28] sm:$0xff] }
 0x6d5   :  { %v397_v41 = vsel %vm395_vm1, %v1453_v5, -3.4028235e+38 }
 0x6d6   :  { %400 = vmax.xlane.f32.xlu1 %v397_v41  ;;  %v1036_v41 = vpack.c.bf16 %v591_v40, %v590_v39 }
 0x6d8   :  { %1037 = vmatprep.subr.bf16.mxu1 %v1036_v41 }
 0x6d9   :  { %1039 = vmatpush3.bf16.msra.mxu1 %v1036_v41 }
 0x75f   :  { %v399_v42 = vpop.xlane.xlu0 %398 }
 0x760   :  { %vm402_vm2 = vcmp.lt.f32.partialorder %v1455_v6, %v399_v42 }
 0x761   :  { %v404_v43 = vsel %vm402_vm2, %v1455_v6, -3.4028235e+38 }
 0x762   :  { %406 = vmax.xlane.f32.xlu0 %v404_v43 }
 0x763   :  { %v401_v44 = vpop.xlane.xlu1 %400 }
 0x764   :  { %vm403_vm3 = vcmp.lt.f32.partialorder %v1453_v5, %v401_v44 }
 0x765   :  { %v405_v45 = vsel %vm403_vm3, %v1453_v5, -3.4028235e+38 }
 0x766   :  { %408 = vmax.xlane.f32.xlu1 %v405_v45 }
 0x7ef   :  { %v407_v46 = vpop.xlane.xlu0 %406 }
 0x7f0   :  { %vm410_vm4 = vcmp.lt.f32.partialorder %v1455_v6, %v407_v46  ;;  %v1275_v46 = vmov 0.0  }
 0x7f1   :  { %v412_v47 = vsel %vm410_vm4, %v1455_v6, -3.4028235e+38 }
 0x7f2   :  { %414 = vmax.xlane.f32.xlu0 %v412_v47 }
 0x7f3   :  { %v409_v48 = vpop.xlane.xlu1 %408 }
 0x7f4   :  { %vm411_vm5 = vcmp.lt.f32.partialorder %v1453_v5, %v409_v48 }
 0x7f5   :  { %v413_v49 = vsel %vm411_vm5, %v1453_v5, -3.4028235e+38 }
 0x7f6   :  { %416 = vmax.xlane.f32.xlu1 %v413_v49 }
 0x87f   :  { %v415_v50 = vpop.xlane.xlu0 %414 }
 0x880   :  { %vm418_vm6 = vcmp.lt.f32.partialorder %v1455_v6, %v415_v50 }
 0x881   :  { %v420_v51 = vsel %vm418_vm6, %v1455_v6, -3.4028235e+38 }
 0x882   :  { %422 = vmax.xlane.f32.xlu0 %v420_v51 }
 0x883   :  { %v417_v52 = vpop.xlane.xlu1 %416 }
 0x884   :  { %vm419_vm7 = vcmp.lt.f32.partialorder %v1453_v5, %v417_v52 }
 0x885   :  { %v421_v53 = vsel %vm419_vm7, %v1453_v5, -3.4028235e+38 }
 0x886   :  { %424 = vmax.xlane.f32.xlu1 %v421_v53 }
 0x90f   :  { %v423_v54 = vpop.xlane.xlu0 %422 }
 0x910   :  { %vm426_vm8 = vcmp.lt.f32.partialorder %v1455_v6, %v423_v54 }
 0x911   :  { %v428_v55 = vsel %vm426_vm8, %v1455_v6, -3.4028235e+38 }
 0x912   :  { %430 = vmax.xlane.f32.xlu0 %v428_v55 }
 0x913   :  { %v425_v56 = vpop.xlane.xlu1 %424 }
 0x914   :  { %vm427_vm9 = vcmp.lt.f32.partialorder %v1453_v5, %v425_v56  ;;  %v592_v56 = vld [vmem:[#allocation11 + $0x30] sm:$0xff] }
 0x915   :  { %v429_v57 = vsel %vm427_vm9, %v1453_v5, -3.4028235e+38 }
 0x916   :  { %432 = vmax.xlane.f32.xlu1 %v429_v57 }
 0x99f   :  { %v431_v58 = vpop.xlane.xlu0 %430 }
 0x9a0   :  { %vm434_vm10 = vcmp.lt.f32.partialorder %v1455_v6, %v431_v58  ;;  %v594_v58 = vld [vmem:[#allocation11 + $0x40] sm:$0xff] }
 0x9a1   :  { %v436_v59 = vsel %vm434_vm10, %v1455_v6, -3.4028235e+38 }
 0x9a2   :  { %438 = vmax.xlane.f32.xlu0 %v436_v59  ;;  %v595_v59 = vld [vmem:[#allocation11 + $0x48] sm:$0xff] }
 0x9a3   :  { %v433_v60 = vpop.xlane.xlu1 %432 }
 0x9a4   :  { %vm435_vm11 = vcmp.lt.f32.partialorder %v1453_v5, %v433_v60  ;;  %v1044_v60 = vpack.c.bf16 %v595_v59, %v594_v58 }
 0x9a5   :  { %v437_v61 = vsel %vm435_vm11, %v1453_v5, -3.4028235e+38 }
 0x9a6   :  { %440 = vmax.xlane.f32.xlu1 %v437_v61  ;;  %v596_v61 = vld [vmem:[#allocation11 + $0x50] sm:$0xff] }
 0xa2f   :  { %v439_v62 = vpop.xlane.xlu0 %438 }
 0xa30   :  { %vm442_vm12 = vcmp.lt.f32.partialorder %v1455_v6, %v439_v62  ;;  %v597_v62 = vld [vmem:[#allocation11 + $0x58] sm:$0xff] }
 0xa31   :  { %v444_v63 = vsel %vm442_vm12, %v1455_v6, -3.4028235e+38 }
 0xa32   :  { %446 = vmax.xlane.f32.xlu0 %v444_v63  ;;  %v598_v63 = vld [vmem:[#allocation11 + $0x60] sm:$0xff] }
 0xa33   :  { %v441_v0 = vpop.xlane.xlu1 %440 }
 0xa34   :  { %vm443_vm13 = vcmp.lt.f32.partialorder %v1453_v5, %v441_v0  ;;  %v599_v0 = vld [vmem:[#allocation11 + $0x68] sm:$0xff] }
 0xa35   :  { %v445_v1 = vsel %vm443_vm13, %v1453_v5, -3.4028235e+38 }
 0xa36   :  { %448 = vmax.xlane.f32.xlu1 %v445_v1  ;;  %v1052_v1 = vpack.c.bf16 %v599_v0, %v598_v63 }
 0xabf   :  { %v447_v25 = vpop.xlane.xlu0 %446 }
 0xac0   :  { %vm450_vm14 = vcmp.lt.f32.partialorder %v1455_v6, %v447_v25 }
 0xac1   :  { %v452_v26 = vsel %vm450_vm14, %v1455_v6, -3.4028235e+38 }
 0xac2   :  { %454 = vmax.xlane.f32.xlu0 %v452_v26 }
 0xac3   :  { %v449_v27 = vpop.xlane.xlu1 %448 }
 0xac4   :  { %vm451_vm15 = vcmp.lt.f32.partialorder %v1453_v5, %v449_v27 }
 0xac5   :  { %v453_v28 = vsel %vm451_vm15, %v1453_v5, -3.4028235e+38 }
 0xac6   :  { %456 = vmax.xlane.f32.xlu1 %v453_v28 }
 0xb4f   :  { %v455_v42 = vpop.xlane.xlu0 %454 }
 0xb50   :  { %v472_v43 = vmax.f32 %v455_v42, 0.0  ;;  %vm458_vm0 = vcmp.ge.f32.partialorder %v1455_v6, %v455_v42 }
 0xb51   :  { %v715_v47 = vsel %vm458_vm0, 1.0, %v1275_v46 }
 0xb52   :  { %vm474_vm1 = vcmp.ge.f32.partialorder %v1455_v6, %v472_v43 }
 0xb53   :  { %v457_v44 = vpop.xlane.xlu1 %456  ;;  %894 = vmatprep.mubr.msk.f32.mxu0 %vm474_vm1, %v1455_v6  ;;  %v593_v6 = vld [vmem:[#allocation11 + $0x38] sm:$0xff] }
 0xb54   :  { %vm459_vm2 = vcmp.ge.f32.partialorder %v1453_v5, %v457_v44  ;;  %v473_v45 = vmax.f32 %v457_v44, 0.0  ;;  %v1040_v57 = vpack.c.bf16 %v593_v6, %v592_v56 }
 0xb55   :  { %v716_v48 = vsel %vm459_vm2, 1.0, %v1275_v46 }
 0xb56   :  { %v464_v49 = vadd.f32 %v716_v48, %v715_v47  ;;  %vm475_vm3 = vcmp.ge.f32.partialorder %v1453_v5, %v473_v45  ;;  %1041 = vmatprep.subr.bf16.mxu1 %v1040_v57 }
 0xb57   :  { %895 = vmatmul.mubr.msk.f32.vlgmr.msra.gmra.mrb[2].mxu0 %vm475_vm3, %v1453_v5  ;;  %1043 = vmatpush3.bf16.msra.mxu1 %v1040_v57  ;;  %v1048_v5 = vpack.c.bf16 %v597_v62, %v596_v61 }
 0xb58   :  { %v465_v50 = vrot.slane %v464_v49, 4  ;;  %1045 = vmatprep.subr.bf16.mxu1 %v1044_v60  ;;  %824 = vmatprep.mubr.f32.mxu0 %v122_v24 }
 0xb5a   :  { %v466_v51 = vadd.f32 %v465_v50, %v464_v49 }
 0xb5b   :  { %1047 = vmatpush3.bf16.msra.mxu1 %v1044_v60 }
 0xb5c   :  { %v467_v52 = vrot.slane %v466_v51, 2  ;;  %1049 = vmatprep.subr.bf16.mxu1 %v1048_v5 }
 0xb5e   :  { %v468_v53 = vadd.f32 %v467_v52, %v466_v51 }
 0xb5f   :  { %1051 = vmatpush3.bf16.msra.mxu1 %v1048_v5 }
 0xb60   :  { %v469_v54 = vrot.slane %v468_v53, 1  ;;  %1053 = vmatprep.subr.bf16.mxu1 %v1052_v1 }
 0xb62   :  { %v470_v55 = vadd.f32 %v469_v54, %v468_v53 }
 0xb63   :  { %1055 = vmatpush3.bf16.msra.mxu1 %v1052_v1 }
 0xb64   :  { %471 = vst [vmem:[#allocation14] sm:$0x1] %v470_v55  ;;  %1057 = vmatprep.subr.bf16.mxu1 %v1056_v4 }
 0xb67   :  { %1059 = vmatpush3.bf16.msra.mxu1 %v1056_v4 }
 0xc2a   :  { %v896_v8 = vpop.f32.mrb[2].mxu0 }
 0xc2b   :  { %v573_v9 = vadd.f32 %v896_v8, %v717_v7  ;;  %v567_v10 = vpop.f32.mrb[3].mxu0 }
 0xc2c   :  { %v568_v11 = vadd.f32 %v717_v7, %v567_v10 }
 0xc2d   :  { %v579_v12 = vmul.f32 0.70710677, %v573_v9  ;;  %v577_v19 = vmul.f32 0.5, %v573_v9 }
 0xc2e   :  { %v578_v13 = vmul.f32 0.70710677, %v568_v11  ;;  %v576_v17 = vmul.f32 0.5, %v568_v11 }
 0xc2f   :  { %1075 = verf.f32 %v579_v12 }
 0xc30   :  { %1077 = verf.f32 %v578_v13 }
 0xc39   :  { %v1076_v14 = vpop.eup %1075 }
 0xc3a   :  { %v1078_v15 = vpop.eup %1077  ;;  %v583_v16 = vadd.f32 1.0, %v1076_v14 }
 0xc3b   :  { %v582_v18 = vadd.f32 1.0, %v1078_v15 }
 0xc3c   :  { %v585_v21 = vmul.f32 %v583_v16, %v577_v19 }
 0xc3d   :  { %v584_v20 = vmul.f32 %v582_v18, %v576_v17 }
 0xc3f   :  { %929 = vmatprep.mubr.f32.mxu1 %v584_v20 }
 0xc40   :  { %930 = vmatmul.mubr.f32.vlgmr.msra.gmra.mrb[2].mxu1 %v585_v21 }
 0xc41   :  { %1222 = shalt.err (!%p1219_p10)
}
 0xc42   :  { %s1223_s12 = scalar_lea.hbm %s1568_s10, 16 }
 0xc43   :  { %p1224_p11 = scmp.ne.s32.totalorder %s1568_s10, %s1223_s12  ;;  %p1227_p12 = scmp.lt.u32.totalorder %s1223_s12, %s1568_s10 }
 0xc45   :  { %p1229_p13 = pnand %p1227_p12, %p1224_p11 }
 0xc47   :  { %1232 = shalt.err (!%p1229_p13)
}
 0xc48   :  { %700 = dma.vmem_to_hbm [thread:$0]  %s698_s29, 16, %s1568_s10, [#allocation15]  }
 0xc49   :  { %s1277_s1 = smov [#allocation13]  }
 0xc4a   :  { %s684_s14 = sshll.u32 %s1277_s1, 4  ;;  %s685_s14 = int_to_ptr.vmem [resolvable:$true] %s684_s14 }
 0xc4b   :  { %s1233_s19 = scalar_lea.vmem %s685_s14, 256  ;;  %p1238_p1 = scmp.lt.s32.totalorder %s685_s14, %s685_s14 }
 0xc4c   :  { %p1234_p0 = scmp.ne.s32.totalorder %s685_s14, %s1233_s19  ;;  %p1239_p2 = scmp.lt.s32.totalorder %s1233_s19, %s1233_s19 }
 0xc4e   :  { %p1240_p3 = por %p1239_p2, %p1238_p1 }
 0xc50   :  { %p1241_p4 = pnand %p1240_p3, %p1234_p0 }
 0xd13   :  { %v931_v25 = vpop.f32.mrb[2].mxu1 }
 0xd14   :  { %v674_v26 = vadd.f32 %v931_v25, %v1444_v33  ;;  %v668_v27 = vpop.f32.mrb[3].mxu1 }
 0xd15   :  { %v669_v28 = vadd.f32 %v668_v27, %v118_v22 }
 0xd16   :  { %678 = vst [vmem:[#allocation13 + $0x8] sm:$0xff] %v674_v26 }
 0xd17   :  { %677 = vst [vmem:[#allocation13] sm:$0xff] %v669_v28 }
 0xd18   :  { %1244 = shalt.err (!%p1241_p4)
}
 0xd19   :  { %s1245_s10 = scalar_lea.hbm %s1567_s9, 256 }
 0xd1a   :  { %p1246_p5 = scmp.ne.s32.totalorder %s1567_s9, %s1245_s10  ;;  %p1249_p6 = scmp.lt.u32.totalorder %s1245_s10, %s1567_s9 }
 0xd1c   :  { %p1251_p7 = pnand %p1249_p6, %p1246_p5 }
 0xd1e   :  { %1254 = shalt.err (!%p1251_p7)
}
 0xd1f   :  { %690 = dma.vmem_to_hbm [thread:$0]  %s685_s14, 256, %s1567_s9, [#allocation4], %s1269_s25, %s1269_s25, %s1270_s26  }
 0xd20   :  { %1263 = dma.done.wait [#allocation4], 256  }
 0xd21   :  { %1264 = vsyncadd [#allocation4], 4294967040 }
 0xd22   :  { %1265 = dma.done.wait [#allocation15], 16  }
 0xd23   :  { %1266 = vsyncadd [#allocation15], 4294967280 }
 0xd24   :  { %707 = vsyncpa [#allocation3], 1 }
 0xd25   :  { %708 = vsyncpa [#allocation6], 1 }
 0xd26   :  { %709 = vsyncpa [#allocation9], 1 }
 0xd27   :  { %710 = vsyncpa [#allocation12], 1 }
 0xd28   :  { %711 = vsyncpa [#allocation4], 1 }
 0xd29   :  { %712 = vsyncpa [#allocation15], 1 }

// kernel: tpu_custom_call.1
= control target key start
LH: loop header
LB: loop body
LE: loop exit
PB: predicated region body
PF: predicated region fallthrough
CT: control target
= control target key end

     0   :  { %16 = vsyncpa [#allocation3], 0  ;;  %s1558_s0 = inlined_call_operand.hbm [shape: f32[16,128], index: 0, kind: input, shape index: {}]   ;;  %s1559_s1 = inlined_call_operand.hbm [shape: f32[16,128], index: 1, kind: input, shape index: {}]   ;;  %s1560_s2 = inlined_call_operand.hbm [shape: f32[128,128], index: 2, kind: input, shape index: {}]   ;;  %s1561_s3 = inlined_call_operand.vmem [shape: f32[1,128], index: 3, kind: input, shape index: {}]   ;;  %s1562_s4 = inlined_call_operand.hbm [shape: f32[128,128], index: 4, kind: input, shape index: {}]   ;;  %s1563_s5 = inlined_call_operand.vmem [shape: f32[1,128], index: 5, kind: input, shape index: {}]   ;;  %s1564_s6 = inlined_call_operand.hbm [shape: f32[128,128], index: 6, kind: input, shape index: {}]   ;;  %s1565_s7 = inlined_call_operand.vmem [shape: f32[1,128], index: 7, kind: input, shape index: {}]   ;;  %s1566_s8 = inlined_call_operand.hbm [shape: f32[128,128], index: 8, kind: input, shape index: {}]   ;;  %s1567_s9 = inlined_call_operand.hbm [shape: f32[16,128], index: 9, kind: output, shape index: {0}]   ;;  %s1568_s10 = inlined_call_operand.hbm [shape: f32[1,1,128], index: 10, kind: output, shape index: {1}]  }
   0x1   :  { %17 = vsyncpa [#allocation6], 0 }
   0x2   :  { %18 = vsyncpa [#allocation9], 0 }
   0x3   :  { %19 = vsyncpa [#allocation12], 0 }
   0x4   :  { %20 = vsyncpa [#allocation4], 0 }
   0x5   :  { %21 = vsyncpa [#allocation15], 0  ;;  %s1267_s13 = smov [#allocation5]   ;;  %s1268_s15 = smov [#allocation8]  }
   0x6   :  { %s39_s14 = sshll.u32 %s1267_s13, 4  ;;  %s65_s16 = sshll.u32 %s1268_s15, 4  ;;  %s40_s14 = int_to_ptr.vmem [resolvable:$true] %s39_s14  ;;  %s1333_s16 = int_to_ptr.vmem [resolvable:$true] %s65_s16 }
   0x7   :  { %s1079_s19 = scalar_lea.hbm %s1559_s1, 256 }
   0x8   :  { %p1080_p0 = scmp.ne.s32.totalorder %s1559_s1, %s1079_s19  ;;  %p1083_p1 = scmp.lt.u32.totalorder %s1079_s19, %s1559_s1 }
   0xa   :  { %p1085_p2 = pnand %p1083_p1, %p1080_p0 }
   0xc   :  { %1088 = shalt.err (!%p1085_p2)
}
   0xd   :  { %s1089_s24 = scalar_lea.vmem %s40_s14, 256  ;;  %p1094_p4 = scmp.lt.s32.totalorder %s40_s14, %s40_s14 }
   0xe   :  { %p1090_p3 = scmp.ne.s32.totalorder %s40_s14, %s1089_s24  ;;  %p1095_p5 = scmp.lt.s32.totalorder %s1089_s24, %s1089_s24 }
  0x10   :  { %p1096_p6 = por %p1095_p5, %p1094_p4 }
  0x12   :  { %p1097_p7 = pnand %p1096_p6, %p1090_p3 }
  0x14   :  { %1100 = shalt.err (!%p1097_p7)
}
  0x15   :  { %s1269_s25 = smov 128   ;;  %s1270_s26 = smov 8  }
  0x16   :  { %45 = dma.hbm_to_vmem [thread:$0]  %s1559_s1, 256, %s40_s14, [#allocation6], %s1269_s25, %s1269_s25, %s1270_s26  }
  0x17   :  { %s1101_s11 = scalar_lea.hbm %s1562_s4, 2048 }
  0x18   :  { %p1102_p8 = scmp.ne.s32.totalorder %s1562_s4, %s1101_s11  ;;  %p1105_p9 = scmp.lt.u32.totalorder %s1101_s11, %s1562_s4 }
  0x1a   :  { %p1107_p10 = pnand %p1105_p9, %p1102_p8 }
  0x1c   :  { %1110 = shalt.err (!%p1107_p10)
}
  0x1d   :  { %s1111_s18 = scalar_lea.vmem %s1333_s16, 2048  ;;  %p1116_p12 = scmp.lt.s32.totalorder %s1333_s16, %s1333_s16 }
  0x1e   :  { %p1112_p11 = scmp.ne.s32.totalorder %s1333_s16, %s1111_s18  ;;  %p1117_p13 = scmp.lt.s32.totalorder %s1111_s18, %s1111_s18 }
  0x20   :  { %p1118_p0 = por %p1117_p13, %p1116_p12 }
  0x22   :  { %p1119_p1 = pnand %p1118_p0, %p1112_p11 }
  0x24   :  { %1122 = shalt.err (!%p1119_p1)
}
  0x25   :  { %71 = dma.hbm_to_vmem [thread:$0]  %s1562_s4, 2048, %s1333_s16, [#allocation9], %s1269_s25, %s1269_s25, %s1270_s26  }
  0x26   :  { %s1271_s19 = smov [#allocation2]   ;;  %s1272_s21 = smov [#allocation7]  }
  0x27   :  { %s27_s20 = sshll.u32 %s1271_s19, 4  ;;  %s51_s22 = sshll.u32 %s1272_s21, 4  ;;  %s28_s20 = int_to_ptr.vmem [resolvable:$true] %s27_s20  ;;  %s1370_s22 = int_to_ptr.vmem [resolvable:$true] %s51_s22 }
  0x28   :  { %s1123_s27 = scalar_lea.hbm %s1558_s0, 256 }
  0x29   :  { %p1124_p2 = scmp.ne.s32.totalorder %s1558_s0, %s1123_s27  ;;  %p1127_p3 = scmp.lt.u32.totalorder %s1123_s27, %s1558_s0 }
  0x2b   :  { %p1129_p4 = pnand %p1127_p3, %p1124_p2 }
  0x2d   :  { %1132 = shalt.err (!%p1129_p4)
}
  0x2e   :  { %s1133_s4 = scalar_lea.vmem %s28_s20, 256  ;;  %p1138_p6 = scmp.lt.s32.totalorder %s28_s20, %s28_s20 }
  0x2f   :  { %p1134_p5 = scmp.ne.s32.totalorder %s28_s20, %s1133_s4  ;;  %p1139_p7 = scmp.lt.s32.totalorder %s1133_s4, %s1133_s4 }
  0x31   :  { %p1140_p8 = por %p1139_p7, %p1138_p6 }
  0x33   :  { %p1141_p9 = pnand %p1140_p8, %p1134_p5 }
  0x35   :  { %1144 = shalt.err (!%p1141_p9)
}
  0x36   :  { %33 = dma.hbm_to_vmem [thread:$0]  %s1558_s0, 256, %s28_s20, [#allocation3], %s1269_s25, %s1269_s25, %s1270_s26  }
  0x37   :  { %s1145_s17 = scalar_lea.hbm %s1560_s2, 2048 }
  0x38   :  { %p1146_p10 = scmp.ne.s32.totalorder %s1560_s2, %s1145_s17  ;;  %p1149_p11 = scmp.lt.u32.totalorder %s1145_s17, %s1560_s2 }
  0x3a   :  { %p1151_p12 = pnand %p1149_p11, %p1146_p10 }
  0x3c   :  { %1154 = shalt.err (!%p1151_p12)
}
  0x3d   :  { %s1155_s21 = scalar_lea.vmem %s1370_s22, 2048  ;;  %p1160_p0 = scmp.lt.s32.totalorder %s1370_s22, %s1370_s22 }
  0x3e   :  { %p1156_p13 = scmp.ne.s32.totalorder %s1370_s22, %s1155_s21  ;;  %p1161_p1 = scmp.lt.s32.totalorder %s1155_s21, %s1155_s21 }
  0x40   :  { %p1162_p2 = por %p1161_p1, %p1160_p0 }
  0x42   :  { %p1163_p3 = pnand %p1162_p2, %p1156_p13 }
  0x44   :  { %1166 = shalt.err (!%p1163_p3)
}
  0x45   :  { %57 = dma.hbm_to_vmem [thread:$0]  %s1560_s2, 2048, %s1370_s22, [#allocation6], %s1269_s25, %s1269_s25, %s1270_s26  }
  0x46   :  { %s1273_s23 = smov [#allocation10]   ;;  %s1274_s27 = smov [#allocation11]  }
  0x47   :  { %s79_s24 = sshll.u32 %s1273_s23, 4  ;;  %s93_s28 = sshll.u32 %s1274_s27, 4  ;;  %s80_s24 = int_to_ptr.vmem [resolvable:$true] %s79_s24  ;;  %s1407_s28 = int_to_ptr.vmem [resolvable:$true] %s93_s28 }
  0x48   :  { %s1167_s11 = scalar_lea.hbm %s1564_s6, 2048 }
  0x49   :  { %p1168_p4 = scmp.ne.s32.totalorder %s1564_s6, %s1167_s11  ;;  %p1171_p5 = scmp.lt.u32.totalorder %s1167_s11, %s1564_s6 }
  0x4b   :  { %p1173_p6 = pnand %p1171_p5, %p1168_p4 }
  0x4d   :  { %1176 = shalt.err (!%p1173_p6)
}
  0x4e   :  { %s1177_s2 = scalar_lea.vmem %s80_s24, 2048  ;;  %p1182_p8 = scmp.lt.s32.totalorder %s80_s24, %s80_s24 }
  0x4f   :  { %p1178_p7 = scmp.ne.s32.totalorder %s80_s24, %s1177_s2  ;;  %p1183_p9 = scmp.lt.s32.totalorder %s1177_s2, %s1177_s2 }
  0x51   :  { %p1184_p10 = por %p1183_p9, %p1182_p8 }
  0x53   :  { %p1185_p11 = pnand %p1184_p10, %p1178_p7 }
  0x55   :  { %1188 = shalt.err (!%p1185_p11)
}
  0x56   :  { %85 = dma.hbm_to_vmem [thread:$0]  %s1564_s6, 2048, %s80_s24, [#allocation9], %s1269_s25, %s1269_s25, %s1270_s26  }
  0x57   :  { %s1189_s1 = scalar_lea.hbm %s1566_s8, 2048 }
  0x58   :  { %p1190_p12 = scmp.ne.s32.totalorder %s1566_s8, %s1189_s1  ;;  %p1193_p13 = scmp.lt.u32.totalorder %s1189_s1, %s1566_s8 }
  0x5a   :  { %p1195_p0 = pnand %p1193_p13, %p1190_p12 }
  0x5c   :  { %1198 = shalt.err (!%p1195_p0)
}
  0x5d   :  { %s1199_s20 = scalar_lea.vmem %s1407_s28, 2048  ;;  %p1204_p2 = scmp.lt.s32.totalorder %s1407_s28, %s1407_s28 }
  0x5e   :  { %p1200_p1 = scmp.ne.s32.totalorder %s1407_s28, %s1199_s20  ;;  %p1205_p3 = scmp.lt.s32.totalorder %s1199_s20, %s1199_s20 }
  0x60   :  { %p1206_p4 = por %p1205_p3, %p1204_p2 }
  0x62   :  { %p1207_p5 = pnand %p1206_p4, %p1200_p1 }
  0x64   :  { %1210 = shalt.err (!%p1207_p5)
}
  0x65   :  { %99 = dma.hbm_to_vmem [thread:$0]  %s1566_s8, 2048, %s1407_s28, [#allocation12], %s1269_s25, %s1269_s25, %s1270_s26  }
  0x66   :  { %1255 = dma.done.wait [#allocation3], 256  }
  0x67   :  { %1256 = vsyncadd [#allocation3], 4294967040 }
  0x68   :  { %1257 = dma.done.wait [#allocation6], 2304  }
  0x69   :  { %1258 = vsyncadd [#allocation6], 4294964992 }
  0x6a   :  { %1259 = dma.done.wait [#allocation9], 4096  }
  0x6b   :  { %1260 = vsyncadd [#allocation9], 4294963200 }
  0x6c   :  { %1261 = dma.done.wait [#allocation12], 2048  }
  0x6d   :  { %1262 = vsyncadd [#allocation12], 4294965248  ;;  %v124_v0 = vld [vmem:[#allocation7] sm:$0xff]  ;;  %v125_v1 = vld [vmem:[#allocation7 + $0x8] sm:$0xff] }
  0x6e   :  { %v126_v2 = vld [vmem:[#allocation7 + $0x10] sm:$0xff]  ;;  %v932_v3 = vpack.c.bf16 %v125_v1, %v124_v0  ;;  %v127_v4 = vld [vmem:[#allocation7 + $0x18] sm:$0xff]  ;;  %v128_v6 = vld [vmem:[#allocation7 + $0x20] sm:$0xff] }
  0x6f   :  { %v936_v5 = vpack.c.bf16 %v127_v4, %v126_v2  ;;  %v129_v7 = vld [vmem:[#allocation7 + $0x28] sm:$0xff]  ;;  %v130_v9 = vld [vmem:[#allocation7 + $0x30] sm:$0xff]  ;;  %v131_v10 = vld [vmem:[#allocation7 + $0x38] sm:$0xff] }
  0x70   :  { %933 = vmatprep.subr.bf16.mxu0 %v932_v3  ;;  %v940_v8 = vpack.c.bf16 %v129_v7, %v128_v6  ;;  %v232_v11 = vld [vmem:[#allocation8] sm:$0xff]  ;;  %v233_v12 = vld [vmem:[#allocation8 + $0x8] sm:$0xff]  ;;  %v234_v13 = vld [vmem:[#allocation8 + $0x10] sm:$0xff]  ;;  %v944_v19 = vpack.c.bf16 %v131_v10, %v130_v9 }
  0x71   :  { %935 = vmatpush3.bf16.msra.mxu0 %v932_v3  ;;  %v964_v14 = vpack.c.bf16 %v233_v12, %v232_v11  ;;  %v235_v15 = vld [vmem:[#allocation8 + $0x18] sm:$0xff]  ;;  %v236_v17 = vld [vmem:[#allocation8 + $0x20] sm:$0xff]  ;;  %v237_v18 = vld [vmem:[#allocation8 + $0x28] sm:$0xff] }
  0x72   :  { %937 = vmatprep.subr.bf16.mxu0 %v936_v5  ;;  %v968_v16 = vpack.c.bf16 %v235_v15, %v234_v13  ;;  %v132_v20 = vld [vmem:[#allocation7 + $0x40] sm:$0xff]  ;;  %v133_v21 = vld [vmem:[#allocation7 + $0x48] sm:$0xff]  ;;  %v972_v22 = vpack.c.bf16 %v237_v18, %v236_v17  ;;  %v134_v24 = vld [vmem:[#allocation7 + $0x50] sm:$0xff] }
  0x73   :  { %965 = vmatprep.subr.bf16.mxu1 %v964_v14  ;;  %v948_v23 = vpack.c.bf16 %v133_v21, %v132_v20  ;;  %v135_v25 = vld [vmem:[#allocation7 + $0x58] sm:$0xff]  ;;  %v136_v27 = vld [vmem:[#allocation7 + $0x60] sm:$0xff]  ;;  %v137_v28 = vld [vmem:[#allocation7 + $0x68] sm:$0xff] }
  0x74   :  { %967 = vmatpush3.bf16.msra.mxu1 %v964_v14  ;;  %v952_v26 = vpack.c.bf16 %v135_v25, %v134_v24  ;;  %v956_v29 = vpack.c.bf16 %v137_v28, %v136_v27  ;;  %v138_v30 = vld [vmem:[#allocation7 + $0x70] sm:$0xff]  ;;  %v139_v31 = vld [vmem:[#allocation7 + $0x78] sm:$0xff]  ;;  %v121_v34 = vld [vmem:[#allocation2 + $0x8] sm:$0xff] }
  0x75   :  { %939 = vmatpush3.bf16.msra.mxu0 %v936_v5  ;;  %969 = vmatprep.subr.bf16.mxu1 %v968_v16  ;;  %v960_v32 = vpack.c.bf16 %v139_v31, %v138_v30  ;;  %v1444_v33 = vld [vmem:[#allocation5 + $0x8] sm:$0xff]  ;;  %v238_v36 = vld [vmem:[#allocation8 + $0x30] sm:$0xff]  ;;  %v240_v39 = vld [vmem:[#allocation8 + $0x40] sm:$0xff] }
  0x76   :  { %941 = vmatprep.subr.bf16.mxu0 %v940_v8  ;;  %v123_v35 = vsub.f32 %v121_v34, %v1444_v33  ;;  %v239_v37 = vld [vmem:[#allocation8 + $0x38] sm:$0xff]  ;;  %v241_v40 = vld [vmem:[#allocation8 + $0x48] sm:$0xff]  ;;  %v242_v42 = vld [vmem:[#allocation8 + $0x50] sm:$0xff] }
  0x77   :  { %v976_v38 = vpack.c.bf16 %v239_v37, %v238_v36  ;;  %v980_v41 = vpack.c.bf16 %v241_v40, %v240_v39  ;;  %v243_v43 = vld [vmem:[#allocation8 + $0x58] sm:$0xff]  ;;  %v244_v45 = vld [vmem:[#allocation8 + $0x60] sm:$0xff]  ;;  %v245_v46 = vld [vmem:[#allocation8 + $0x68] sm:$0xff] }
  0x78   :  { %971 = vmatpush3.bf16.msra.mxu1 %v968_v16  ;;  %v984_v44 = vpack.c.bf16 %v243_v43, %v242_v42  ;;  %v988_v47 = vpack.c.bf16 %v245_v46, %v244_v45  ;;  %v246_v48 = vld [vmem:[#allocation8 + $0x70] sm:$0xff]  ;;  %v247_v49 = vld [vmem:[#allocation8 + $0x78] sm:$0xff]  ;;  %v713_v51 = vld [vmem:[%s1561_s3] ss:$0 sm:$0xff] }
  0x79   :  { %943 = vmatpush3.bf16.msra.mxu0 %v940_v8  ;;  %973 = vmatprep.subr.bf16.mxu1 %v972_v22  ;;  %v992_v50 = vpack.c.bf16 %v247_v49, %v246_v48  ;;  %v714_v2 = vld [vmem:[%s1563_s5] ss:$0 sm:$0xff] }
  0x7a   :  { %945 = vmatprep.subr.bf16.mxu0 %v944_v19 }
  0x7c   :  { %975 = vmatpush3.bf16.msra.mxu1 %v972_v22 }
  0x7d   :  { %947 = vmatpush3.bf16.msra.mxu0 %v944_v19  ;;  %977 = vmatprep.subr.bf16.mxu1 %v976_v38 }
  0x7e   :  { %949 = vmatprep.subr.bf16.mxu0 %v948_v23 }
  0x80   :  { %979 = vmatpush3.bf16.msra.mxu1 %v976_v38 }
  0x81   :  { %951 = vmatpush3.bf16.msra.mxu0 %v948_v23  ;;  %981 = vmatprep.subr.bf16.mxu1 %v980_v41 }
  0x82   :  { %953 = vmatprep.subr.bf16.mxu0 %v952_v26 }
  0x84   :  { %983 = vmatpush3.bf16.msra.mxu1 %v980_v41 }
  0x85   :  { %955 = vmatpush3.bf16.msra.mxu0 %v952_v26  ;;  %985 = vmatprep.subr.bf16.mxu1 %v984_v44 }
  0x86   :  { %957 = vmatprep.subr.bf16.mxu0 %v956_v29 }
  0x88   :  { %987 = vmatpush3.bf16.msra.mxu1 %v984_v44 }
  0x89   :  { %959 = vmatpush3.bf16.msra.mxu0 %v956_v29  ;;  %989 = vmatprep.subr.bf16.mxu1 %v988_v47 }
  0x8a   :  { %961 = vmatprep.subr.bf16.mxu0 %v960_v32 }
  0x8c   :  { %991 = vmatpush3.bf16.msra.mxu1 %v988_v47 }
  0x8d   :  { %963 = vmatpush3.bf16.msra.mxu0 %v960_v32  ;;  %993 = vmatprep.subr.bf16.mxu1 %v992_v50 }
  0x90   :  { %825 = vmatmul.mubr.f32.vlgmr.msra.gmra.mrb[0].mxu0 %v123_v35  ;;  %995 = vmatpush3.bf16.msra.mxu1 %v992_v50 }
 0x163   :  { %v826_v52 = vpop.f32.mrb[0].mxu0 }
 0x164   :  { %v219_v53 = vadd.f32 %v826_v52, %v713_v51  ;;  %v213_v54 = vpop.f32.mrb[1].mxu0 }
 0x165   :  { %v214_v55 = vadd.f32 %v713_v51, %v213_v54 }
 0x166   :  { %v225_v56 = vmul.f32 0.70710677, %v219_v53  ;;  %v223_v63 = vmul.f32 0.5, %v219_v53 }
 0x167   :  { %v224_v57 = vmul.f32 0.70710677, %v214_v55  ;;  %v222_v61 = vmul.f32 0.5, %v214_v55 }
 0x168   :  { %1071 = verf.f32 %v225_v56 }
 0x169   :  { %1073 = verf.f32 %v224_v57 }
 0x172   :  { %v1072_v58 = vpop.eup %1071 }
 0x173   :  { %v1074_v59 = vpop.eup %1073  ;;  %v229_v60 = vadd.f32 1.0, %v1072_v58 }
 0x174   :  { %v228_v62 = vadd.f32 1.0, %v1074_v59 }
 0x175   :  { %v231_v1 = vmul.f32 %v229_v60, %v223_v63 }
 0x176   :  { %v230_v0 = vmul.f32 %v228_v62, %v222_v61 }
 0x178   :  { %859 = vmatprep.mubr.f32.mxu1 %v230_v0 }
 0x179   :  { %860 = vmatmul.mubr.f32.vlgmr.msra.gmra.mrb[0].mxu1 %v231_v1 }
 0x24c   :  { %v861_v3 = vpop.f32.mrb[0].mxu1 }
 0x24d   :  { %v321_v4 = vpop.f32.mrb[1].mxu1  ;;  %v1453_v5 = vadd.f32 %v861_v3, %v714_v2  ;;  %v479_v3 = vld [vmem:[#allocation10 + $0x8] sm:$0xff] }
 0x24e   :  { %v1455_v6 = vadd.f32 %v714_v2, %v321_v4  ;;  %v478_v2 = vld [vmem:[#allocation10] sm:$0xff]  ;;  %v480_v4 = vld [vmem:[#allocation10 + $0x10] sm:$0xff] }
 0x24f   :  { %vm331_vm1 = vcmp.lt.f32.partialorder %v1453_v5, inf }
 0x250   :  { %vm330_vm0 = vcmp.lt.f32.partialorder %v1455_v6, inf  ;;  %v333_v8 = vsel %vm331_vm1, %v1453_v5, -3.4028235e+38 }
 0x251   :  { %v332_v7 = vsel %vm330_vm0, %v1455_v6, -3.4028235e+38 }
 0x252   :  { %334 = vmax.xlane.f32.xlu0 %v332_v7  ;;  %v996_v7 = vpack.c.bf16 %v479_v3, %v478_v2  ;;  %v600_v2 = vld [vmem:[#allocation11 + $0x70] sm:$0xff]  ;;  %v601_v3 = vld [vmem:[#allocation11 + $0x78] sm:$0xff] }
 0x254   :  { %997 = vmatprep.subr.bf16.mxu0 %v996_v7 }
 0x255   :  { %999 = vmatpush3.bf16.msra.mxu0 %v996_v7  ;;  %v717_v7 = vld [vmem:[%s1565_s7] ss:$0 sm:$0xff]  ;;  %s1276_s7 = smov [#allocation14]  }
 0x256   :  { %336 = vmax.xlane.f32.xlu0 %v333_v8  ;;  %v481_v8 = vld [vmem:[#allocation10 + $0x18] sm:$0xff]  ;;  %s697_s29 = sshll.u32 %s1276_s7, 4  ;;  %s698_s29 = int_to_ptr.vmem [resolvable:$true] %s697_s29 }
 0x257   :  { %s1211_s30 = scalar_lea.vmem %s698_s29, 16  ;;  %s1215_s11 = scalar_lea.vmem %s698_s29, 32 }
 0x258   :  { %p1212_p6 = scmp.ne.s32.totalorder %s698_s29, %s1211_s30  ;;  %p1216_p7 = scmp.lt.s32.totalorder %s698_s29, %s698_s29 }
 0x259   :  { %p1217_p8 = scmp.lt.s32.totalorder %s1215_s11, %s1211_s30 }
 0x25b   :  { %p1218_p9 = por %p1217_p8, %p1216_p7 }
 0x25d   :  { %p1219_p10 = pnand %p1218_p9, %p1212_p6 }
 0x2df   :  { %v335_v9 = vpop.xlane.xlu0 %334 }
 0x2e0   :  { %vm338_vm2 = vcmp.lt.f32.partialorder %v1455_v6, %v335_v9  ;;  %v1000_v9 = vpack.c.bf16 %v481_v8, %v480_v4  ;;  %v1056_v4 = vpack.c.bf16 %v601_v3, %v600_v2 }
 0x2e1   :  { %v340_v10 = vsel %vm338_vm2, %v1455_v6, -3.4028235e+38 }
 0x2e2   :  { %342 = vmax.xlane.f32.xlu1 %v340_v10  ;;  %v482_v10 = vld [vmem:[#allocation10 + $0x20] sm:$0xff]  ;;  %1001 = vmatprep.subr.bf16.mxu0 %v1000_v9 }
 0x2e3   :  { %v337_v11 = vpop.xlane.xlu0 %336  ;;  %1003 = vmatpush3.bf16.msra.mxu0 %v1000_v9 }
 0x2e4   :  { %vm339_vm3 = vcmp.lt.f32.partialorder %v1453_v5, %v337_v11  ;;  %v483_v11 = vld [vmem:[#allocation10 + $0x28] sm:$0xff] }
 0x2e5   :  { %v341_v12 = vsel %vm339_vm3, %v1453_v5, -3.4028235e+38 }
 0x2e6   :  { %344 = vmax.xlane.f32.xlu1 %v341_v12  ;;  %v1004_v12 = vpack.c.bf16 %v483_v11, %v482_v10 }
 0x2e8   :  { %1005 = vmatprep.subr.bf16.mxu0 %v1004_v12 }
 0x2e9   :  { %1007 = vmatpush3.bf16.msra.mxu0 %v1004_v12 }
 0x36f   :  { %v343_v13 = vpop.xlane.xlu1 %342 }
 0x370   :  { %vm346_vm4 = vcmp.lt.f32.partialorder %v1455_v6, %v343_v13  ;;  %v484_v13 = vld [vmem:[#allocation10 + $0x30] sm:$0xff] }
 0x371   :  { %v348_v14 = vsel %vm346_vm4, %v1455_v6, -3.4028235e+38 }
 0x372   :  { %350 = vmax.xlane.f32.xlu0 %v348_v14  ;;  %v485_v14 = vld [vmem:[#allocation10 + $0x38] sm:$0xff] }
 0x373   :  { %v345_v15 = vpop.xlane.xlu1 %344 }
 0x374   :  { %vm347_vm5 = vcmp.lt.f32.partialorder %v1453_v5, %v345_v15  ;;  %v1008_v15 = vpack.c.bf16 %v485_v14, %v484_v13 }
 0x375   :  { %v349_v16 = vsel %vm347_vm5, %v1453_v5, -3.4028235e+38 }
 0x376   :  { %352 = vmax.xlane.f32.xlu1 %v349_v16  ;;  %v486_v16 = vld [vmem:[#allocation10 + $0x40] sm:$0xff]  ;;  %1009 = vmatprep.subr.bf16.mxu0 %v1008_v15 }
 0x377   :  { %1011 = vmatpush3.bf16.msra.mxu0 %v1008_v15 }
 0x3ff   :  { %v351_v17 = vpop.xlane.xlu0 %350 }
 0x400   :  { %vm354_vm6 = vcmp.lt.f32.partialorder %v1455_v6, %v351_v17  ;;  %v487_v17 = vld [vmem:[#allocation10 + $0x48] sm:$0xff] }
 0x401   :  { %v356_v18 = vsel %vm354_vm6, %v1455_v6, -3.4028235e+38 }
 0x402   :  { %358 = vmax.xlane.f32.xlu0 %v356_v18  ;;  %v1012_v18 = vpack.c.bf16 %v487_v17, %v486_v16 }
 0x403   :  { %v353_v19 = vpop.xlane.xlu1 %352 }
 0x404   :  { %vm355_vm7 = vcmp.lt.f32.partialorder %v1453_v5, %v353_v19  ;;  %v488_v19 = vld [vmem:[#allocation10 + $0x50] sm:$0xff]  ;;  %1013 = vmatprep.subr.bf16.mxu0 %v1012_v18 }
 0x405   :  { %v357_v20 = vsel %vm355_vm7, %v1453_v5, -3.4028235e+38  ;;  %1015 = vmatpush3.bf16.msra.mxu0 %v1012_v18 }
 0x406   :  { %360 = vmax.xlane.f32.xlu1 %v357_v20  ;;  %v489_v20 = vld [vmem:[#allocation10 + $0x58] sm:$0xff] }
 0x48f   :  { %v359_v21 = vpop.xlane.xlu0 %358 }
 0x490   :  { %vm362_vm8 = vcmp.lt.f32.partialorder %v1455_v6, %v359_v21  ;;  %v1016_v21 = vpack.c.bf16 %v489_v20, %v488_v19 }
 0x491   :  { %v364_v22 = vsel %vm362_vm8, %v1455_v6, -3.4028235e+38 }
 0x492   :  { %366 = vmax.xlane.f32.xlu0 %v364_v22  ;;  %v490_v22 = vld [vmem:[#allocation10 + $0x60] sm:$0xff]  ;;  %1017 = vmatprep.subr.bf16.mxu0 %v1016_v21 }
 0x493   :  { %v361_v23 = vpop.xlane.xlu1 %360  ;;  %1019 = vmatpush3.bf16.msra.mxu0 %v1016_v21 }
 0x494   :  { %vm363_vm9 = vcmp.lt.f32.partialorder %v1453_v5, %v361_v23  ;;  %v491_v23 = vld [vmem:[#allocation10 + $0x68] sm:$0xff] }
 0x495   :  { %v365_v24 = vsel %vm363_vm9, %v1453_v5, -3.4028235e+38 }
 0x496   :  { %368 = vmax.xlane.f32.xlu1 %v365_v24  ;;  %v1020_v24 = vpack.c.bf16 %v491_v23, %v490_v22  ;;  %v118_v22 = vld [vmem:[#allocation5] sm:$0xff]  ;;  %v120_v23 = vld [vmem:[#allocation2] sm:$0xff] }
 0x498   :  { %1021 = vmatprep.subr.bf16.mxu0 %v1020_v24 }
 0x499   :  { %1023 = vmatpush3.bf16.msra.mxu0 %v1020_v24  ;;  %v122_v24 = vsub.f32 %v120_v23, %v118_v22 }
 0x51f   :  { %v367_v25 = vpop.xlane.xlu0 %366 }
 0x520   :  { %vm370_vm10 = vcmp.lt.f32.partialorder %v1455_v6, %v367_v25 }
 0x521   :  { %v372_v26 = vsel %vm370_vm10, %v1455_v6, -3.4028235e+38 }
 0x522   :  { %374 = vmax.xlane.f32.xlu0 %v372_v26 }
 0x523   :  { %v369_v27 = vpop.xlane.xlu1 %368 }
 0x524   :  { %vm371_vm11 = vcmp.lt.f32.partialorder %v1453_v5, %v369_v27 }
 0x525   :  { %v373_v28 = vsel %vm371_vm11, %v1453_v5, -3.4028235e+38 }
 0x526   :  { %376 = vmax.xlane.f32.xlu1 %v373_v28 }
 0x5af   :  { %v375_v29 = vpop.xlane.xlu0 %374 }
 0x5b0   :  { %vm378_vm12 = vcmp.lt.f32.partialorder %v1455_v6, %v375_v29  ;;  %v492_v29 = vld [vmem:[#allocation10 + $0x70] sm:$0xff] }
 0x5b1   :  { %v380_v30 = vsel %vm378_vm12, %v1455_v6, -3.4028235e+38 }
 0x5b2   :  { %382 = vmax.xlane.f32.xlu0 %v380_v30  ;;  %v493_v30 = vld [vmem:[#allocation10 + $0x78] sm:$0xff] }
 0x5b3   :  { %v377_v31 = vpop.xlane.xlu1 %376 }
 0x5b4   :  { %vm379_vm13 = vcmp.lt.f32.partialorder %v1453_v5, %v377_v31  ;;  %v1024_v31 = vpack.c.bf16 %v493_v30, %v492_v29 }
 0x5b5   :  { %v381_v32 = vsel %vm379_vm13, %v1453_v5, -3.4028235e+38 }
 0x5b6   :  { %384 = vmax.xlane.f32.xlu1 %v381_v32  ;;  %1025 = vmatprep.subr.bf16.mxu0 %v1024_v31  ;;  %v586_v32 = vld [vmem:[#allocation11] sm:$0xff] }
 0x5b7   :  { %1027 = vmatpush3.bf16.msra.mxu0 %v1024_v31 }
 0x63f   :  { %v383_v34 = vpop.xlane.xlu0 %382 }
 0x640   :  { %vm386_vm14 = vcmp.lt.f32.partialorder %v1455_v6, %v383_v34  ;;  %v587_v34 = vld [vmem:[#allocation11 + $0x8] sm:$0xff] }
 0x641   :  { %v388_v35 = vsel %vm386_vm14, %v1455_v6, -3.4028235e+38 }
 0x642   :  { %390 = vmax.xlane.f32.xlu0 %v388_v35  ;;  %v588_v35 = vld [vmem:[#allocation11 + $0x10] sm:$0xff] }
 0x643   :  { %v385_v36 = vpop.xlane.xlu1 %384 }
 0x644   :  { %vm387_vm15 = vcmp.lt.f32.partialorder %v1453_v5, %v385_v36  ;;  %v1028_v36 = vpack.c.bf16 %v587_v34, %v586_v32 }
 0x645   :  { %v389_v37 = vsel %vm387_vm15, %v1453_v5, -3.4028235e+38 }
 0x646   :  { %392 = vmax.xlane.f32.xlu1 %v389_v37  ;;  %v589_v37 = vld [vmem:[#allocation11 + $0x18] sm:$0xff]  ;;  %1029 = vmatprep.subr.bf16.mxu1 %v1028_v36 }
 0x647   :  { %1031 = vmatpush3.bf16.msra.mxu1 %v1028_v36 }
 0x6cf   :  { %v391_v38 = vpop.xlane.xlu0 %390 }
 0x6d0   :  { %vm394_vm0 = vcmp.lt.f32.partialorder %v1455_v6, %v391_v38  ;;  %v1032_v38 = vpack.c.bf16 %v589_v37, %v588_v35 }
 0x6d1   :  { %v396_v39 = vsel %vm394_vm0, %v1455_v6, -3.4028235e+38 }
 0x6d2   :  { %398 = vmax.xlane.f32.xlu0 %v396_v39  ;;  %v590_v39 = vld [vmem:[#allocation11 + $0x20] sm:$0xff]  ;;  %1033 = vmatprep.subr.bf16.mxu1 %v1032_v38 }
 0x6d3   :  { %v393_v40 = vpop.xlane.xlu1 %392  ;;  %1035 = vmatpush3.bf16.msra.mxu1 %v1032_v38 }
 0x6d4   :  { %vm395_vm1 = vcmp.lt.f32.partialorder %v1453_v5, %v393_v40  ;;  %v591_v40 = vld [vmem:[#allocation11 + $0x28] sm:$0xff] }
 0x6d5   :  { %v397_v41 = vsel %vm395_vm1, %v1453_v5, -3.4028235e+38 }
 0x6d6   :  { %400 = vmax.xlane.f32.xlu1 %v397_v41  ;;  %v1036_v41 = vpack.c.bf16 %v591_v40, %v590_v39 }
 0x6d8   :  { %1037 = vmatprep.subr.bf16.mxu1 %v1036_v41 }
 0x6d9   :  { %1039 = vmatpush3.bf16.msra.mxu1 %v1036_v41 }
 0x75f   :  { %v399_v42 = vpop.xlane.xlu0 %398 }
 0x760   :  { %vm402_vm2 = vcmp.lt.f32.partialorder %v1455_v6, %v399_v42 }
 0x761   :  { %v404_v43 = vsel %vm402_vm2, %v1455_v6, -3.4028235e+38 }
 0x762   :  { %406 = vmax.xlane.f32.xlu0 %v404_v43 }
 0x763   :  { %v401_v44 = vpop.xlane.xlu1 %400 }
 0x764   :  { %vm403_vm3 = vcmp.lt.f32.partialorder %v1453_v5, %v401_v44 }
 0x765   :  { %v405_v45 = vsel %vm403_vm3, %v1453_v5, -3.4028235e+38 }
 0x766   :  { %408 = vmax.xlane.f32.xlu1 %v405_v45 }
 0x7ef   :  { %v407_v46 = vpop.xlane.xlu0 %406 }
 0x7f0   :  { %vm410_vm4 = vcmp.lt.f32.partialorder %v1455_v6, %v407_v46  ;;  %v1275_v46 = vmov 0.0  }
 0x7f1   :  { %v412_v47 = vsel %vm410_vm4, %v1455_v6, -3.4028235e+38 }
 0x7f2   :  { %414 = vmax.xlane.f32.xlu0 %v412_v47 }
 0x7f3   :  { %v409_v48 = vpop.xlane.xlu1 %408 }
 0x7f4   :  { %vm411_vm5 = vcmp.lt.f32.partialorder %v1453_v5, %v409_v48 }
 0x7f5   :  { %v413_v49 = vsel %vm411_vm5, %v1453_v5, -3.4028235e+38 }
 0x7f6   :  { %416 = vmax.xlane.f32.xlu1 %v413_v49 }
 0x87f   :  { %v415_v50 = vpop.xlane.xlu0 %414 }
 0x880   :  { %vm418_vm6 = vcmp.lt.f32.partialorder %v1455_v6, %v415_v50 }
 0x881   :  { %v420_v51 = vsel %vm418_vm6, %v1455_v6, -3.4028235e+38 }
 0x882   :  { %422 = vmax.xlane.f32.xlu0 %v420_v51 }
 0x883   :  { %v417_v52 = vpop.xlane.xlu1 %416 }
 0x884   :  { %vm419_vm7 = vcmp.lt.f32.partialorder %v1453_v5, %v417_v52 }
 0x885   :  { %v421_v53 = vsel %vm419_vm7, %v1453_v5, -3.4028235e+38 }
 0x886   :  { %424 = vmax.xlane.f32.xlu1 %v421_v53 }
 0x90f   :  { %v423_v54 = vpop.xlane.xlu0 %422 }
 0x910   :  { %vm426_vm8 = vcmp.lt.f32.partialorder %v1455_v6, %v423_v54 }
 0x911   :  { %v428_v55 = vsel %vm426_vm8, %v1455_v6, -3.4028235e+38 }
 0x912   :  { %430 = vmax.xlane.f32.xlu0 %v428_v55 }
 0x913   :  { %v425_v56 = vpop.xlane.xlu1 %424 }
 0x914   :  { %vm427_vm9 = vcmp.lt.f32.partialorder %v1453_v5, %v425_v56  ;;  %v592_v56 = vld [vmem:[#allocation11 + $0x30] sm:$0xff] }
 0x915   :  { %v429_v57 = vsel %vm427_vm9, %v1453_v5, -3.4028235e+38 }
 0x916   :  { %432 = vmax.xlane.f32.xlu1 %v429_v57 }
 0x99f   :  { %v431_v58 = vpop.xlane.xlu0 %430 }
 0x9a0   :  { %vm434_vm10 = vcmp.lt.f32.partialorder %v1455_v6, %v431_v58  ;;  %v594_v58 = vld [vmem:[#allocation11 + $0x40] sm:$0xff] }
 0x9a1   :  { %v436_v59 = vsel %vm434_vm10, %v1455_v6, -3.4028235e+38 }
 0x9a2   :  { %438 = vmax.xlane.f32.xlu0 %v436_v59  ;;  %v595_v59 = vld [vmem:[#allocation11 + $0x48] sm:$0xff] }
 0x9a3   :  { %v433_v60 = vpop.xlane.xlu1 %432 }
 0x9a4   :  { %vm435_vm11 = vcmp.lt.f32.partialorder %v1453_v5, %v433_v60  ;;  %v1044_v60 = vpack.c.bf16 %v595_v59, %v594_v58 }
 0x9a5   :  { %v437_v61 = vsel %vm435_vm11, %v1453_v5, -3.4028235e+38 }
 0x9a6   :  { %440 = vmax.xlane.f32.xlu1 %v437_v61  ;;  %v596_v61 = vld [vmem:[#allocation11 + $0x50] sm:$0xff] }
 0xa2f   :  { %v439_v62 = vpop.xlane.xlu0 %438 }
 0xa30   :  { %vm442_vm12 = vcmp.lt.f32.partialorder %v1455_v6, %v439_v62  ;;  %v597_v62 = vld [vmem:[#allocation11 + $0x58] sm:$0xff] }
 0xa31   :  { %v444_v63 = vsel %vm442_vm12, %v1455_v6, -3.4028235e+38 }
 0xa32   :  { %446 = vmax.xlane.f32.xlu0 %v444_v63  ;;  %v598_v63 = vld [vmem:[#allocation11 + $0x60] sm:$0xff] }
 0xa33   :  { %v441_v0 = vpop.xlane.xlu1 %440 }
 0xa34   :  { %vm443_vm13 = vcmp.lt.f32.partialorder %v1453_v5, %v441_v0  ;;  %v599_v0 = vld [vmem:[#allocation11 + $0x68] sm:$0xff] }
 0xa35   :  { %v445_v1 = vsel %vm443_vm13, %v1453_v5, -3.4028235e+38 }
 0xa36   :  { %448 = vmax.xlane.f32.xlu1 %v445_v1  ;;  %v1052_v1 = vpack.c.bf16 %v599_v0, %v598_v63 }
 0xabf   :  { %v447_v25 = vpop.xlane.xlu0 %446 }
 0xac0   :  { %vm450_vm14 = vcmp.lt.f32.partialorder %v1455_v6, %v447_v25 }
 0xac1   :  { %v452_v26 = vsel %vm450_vm14, %v1455_v6, -3.4028235e+38 }
 0xac2   :  { %454 = vmax.xlane.f32.xlu0 %v452_v26 }
 0xac3   :  { %v449_v27 = vpop.xlane.xlu1 %448 }
 0xac4   :  { %vm451_vm15 = vcmp.lt.f32.partialorder %v1453_v5, %v449_v27 }
 0xac5   :  { %v453_v28 = vsel %vm451_vm15, %v1453_v5, -3.4028235e+38 }
 0xac6   :  { %456 = vmax.xlane.f32.xlu1 %v453_v28 }
 0xb4f   :  { %v455_v42 = vpop.xlane.xlu0 %454 }
 0xb50   :  { %v472_v43 = vmax.f32 %v455_v42, 0.0  ;;  %vm458_vm0 = vcmp.ge.f32.partialorder %v1455_v6, %v455_v42 }
 0xb51   :  { %v715_v47 = vsel %vm458_vm0, 1.0, %v1275_v46 }
 0xb52   :  { %vm474_vm1 = vcmp.ge.f32.partialorder %v1455_v6, %v472_v43 }
 0xb53   :  { %v457_v44 = vpop.xlane.xlu1 %456  ;;  %894 = vmatprep.mubr.msk.f32.mxu0 %vm474_vm1, %v1455_v6  ;;  %v593_v6 = vld [vmem:[#allocation11 + $0x38] sm:$0xff] }
 0xb54   :  { %vm459_vm2 = vcmp.ge.f32.partialorder %v1453_v5, %v457_v44  ;;  %v473_v45 = vmax.f32 %v457_v44, 0.0  ;;  %v1040_v57 = vpack.c.bf16 %v593_v6, %v592_v56 }
 0xb55   :  { %v716_v48 = vsel %vm459_vm2, 1.0, %v1275_v46 }
 0xb56   :  { %v464_v49 = vadd.f32 %v716_v48, %v715_v47  ;;  %vm475_vm3 = vcmp.ge.f32.partialorder %v1453_v5, %v473_v45  ;;  %1041 = vmatprep.subr.bf16.mxu1 %v1040_v57 }
 0xb57   :  { %895 = vmatmul.mubr.msk.f32.vlgmr.msra.gmra.mrb[2].mxu0 %vm475_vm3, %v1453_v5  ;;  %1043 = vmatpush3.bf16.msra.mxu1 %v1040_v57  ;;  %v1048_v5 = vpack.c.bf16 %v597_v62, %v596_v61 }
 0xb58   :  { %v465_v50 = vrot.slane %v464_v49, 4  ;;  %1045 = vmatprep.subr.bf16.mxu1 %v1044_v60  ;;  %824 = vmatprep.mubr.f32.mxu0 %v122_v24 }
 0xb5a   :  { %v466_v51 = vadd.f32 %v465_v50, %v464_v49 }
 0xb5b   :  { %1047 = vmatpush3.bf16.msra.mxu1 %v1044_v60 }
 0xb5c   :  { %v467_v52 = vrot.slane %v466_v51, 2  ;;  %1049 = vmatprep.subr.bf16.mxu1 %v1048_v5 }
 0xb5e   :  { %v468_v53 = vadd.f32 %v467_v52, %v466_v51 }
 0xb5f   :  { %1051 = vmatpush3.bf16.msra.mxu1 %v1048_v5 }
 0xb60   :  { %v469_v54 = vrot.slane %v468_v53, 1  ;;  %1053 = vmatprep.subr.bf16.mxu1 %v1052_v1 }
 0xb62   :  { %v470_v55 = vadd.f32 %v469_v54, %v468_v53 }
 0xb63   :  { %1055 = vmatpush3.bf16.msra.mxu1 %v1052_v1 }
 0xb64   :  { %471 = vst [vmem:[#allocation14] sm:$0x1] %v470_v55  ;;  %1057 = vmatprep.subr.bf16.mxu1 %v1056_v4 }
 0xb67   :  { %1059 = vmatpush3.bf16.msra.mxu1 %v1056_v4 }
 0xc2a   :  { %v896_v8 = vpop.f32.mrb[2].mxu0 }
 0xc2b   :  { %v573_v9 = vadd.f32 %v896_v8, %v717_v7  ;;  %v567_v10 = vpop.f32.mrb[3].mxu0 }
 0xc2c   :  { %v568_v11 = vadd.f32 %v717_v7, %v567_v10 }
 0xc2d   :  { %v579_v12 = vmul.f32 0.70710677, %v573_v9  ;;  %v577_v19 = vmul.f32 0.5, %v573_v9 }
 0xc2e   :  { %v578_v13 = vmul.f32 0.70710677, %v568_v11  ;;  %v576_v17 = vmul.f32 0.5, %v568_v11 }
 0xc2f   :  { %1075 = verf.f32 %v579_v12 }
 0xc30   :  { %1077 = verf.f32 %v578_v13 }
 0xc39   :  { %v1076_v14 = vpop.eup %1075 }
 0xc3a   :  { %v1078_v15 = vpop.eup %1077  ;;  %v583_v16 = vadd.f32 1.0, %v1076_v14 }
 0xc3b   :  { %v582_v18 = vadd.f32 1.0, %v1078_v15 }
 0xc3c   :  { %v585_v21 = vmul.f32 %v583_v16, %v577_v19 }
 0xc3d   :  { %v584_v20 = vmul.f32 %v582_v18, %v576_v17 }
 0xc3f   :  { %929 = vmatprep.mubr.f32.mxu1 %v584_v20 }
 0xc40   :  { %930 = vmatmul.mubr.f32.vlgmr.msra.gmra.mrb[2].mxu1 %v585_v21 }
 0xc41   :  { %1222 = shalt.err (!%p1219_p10)
}
 0xc42   :  { %s1223_s12 = scalar_lea.hbm %s1568_s10, 16 }
 0xc43   :  { %p1224_p11 = scmp.ne.s32.totalorder %s1568_s10, %s1223_s12  ;;  %p1227_p12 = scmp.lt.u32.totalorder %s1223_s12, %s1568_s10 }
 0xc45   :  { %p1229_p13 = pnand %p1227_p12, %p1224_p11 }
 0xc47   :  { %1232 = shalt.err (!%p1229_p13)
}
 0xc48   :  { %700 = dma.vmem_to_hbm [thread:$0]  %s698_s29, 16, %s1568_s10, [#allocation15]  }
 0xc49   :  { %s1277_s1 = smov [#allocation13]  }
 0xc4a   :  { %s684_s14 = sshll.u32 %s1277_s1, 4  ;;  %s685_s14 = int_to_ptr.vmem [resolvable:$true] %s684_s14 }
 0xc4b   :  { %s1233_s19 = scalar_lea.vmem %s685_s14, 256  ;;  %p1238_p1 = scmp.lt.s32.totalorder %s685_s14, %s685_s14 }
 0xc4c   :  { %p1234_p0 = scmp.ne.s32.totalorder %s685_s14, %s1233_s19  ;;  %p1239_p2 = scmp.lt.s32.totalorder %s1233_s19, %s1233_s19 }
 0xc4e   :  { %p1240_p3 = por %p1239_p2, %p1238_p1 }
 0xc50   :  { %p1241_p4 = pnand %p1240_p3, %p1234_p0 }
 0xd13   :  { %v931_v25 = vpop.f32.mrb[2].mxu1 }
 0xd14   :  { %v674_v26 = vadd.f32 %v931_v25, %v1444_v33  ;;  %v668_v27 = vpop.f32.mrb[3].mxu1 }
 0xd15   :  { %v669_v28 = vadd.f32 %v668_v27, %v118_v22 }
 0xd16   :  { %678 = vst [vmem:[#allocation13 + $0x8] sm:$0xff] %v674_v26 }
 0xd17   :  { %677 = vst [vmem:[#allocation13] sm:$0xff] %v669_v28 }
 0xd18   :  { %1244 = shalt.err (!%p1241_p4)
}
 0xd19   :  { %s1245_s10 = scalar_lea.hbm %s1567_s9, 256 }
 0xd1a   :  { %p1246_p5 = scmp.ne.s32.totalorder %s1567_s9, %s1245_s10  ;;  %p1249_p6 = scmp.lt.u32.totalorder %s1245_s10, %s1567_s9 }
 0xd1c   :  { %p1251_p7 = pnand %p1249_p6, %p1246_p5 }
 0xd1e   :  { %1254 = shalt.err (!%p1251_p7)
}
 0xd1f   :  { %690 = dma.vmem_to_hbm [thread:$0]  %s685_s14, 256, %s1567_s9, [#allocation4], %s1269_s25, %s1269_s25, %s1270_s26  }
 0xd20   :  { %1263 = dma.done.wait [#allocation4], 256  }
 0xd21   :  { %1264 = vsyncadd [#allocation4], 4294967040 }
 0xd22   :  { %1265 = dma.done.wait [#allocation15], 16  }
 0xd23   :  { %1266 = vsyncadd [#allocation15], 4294967280 }
 0xd24   :  { %707 = vsyncpa [#allocation3], 1 }
 0xd25   :  { %708 = vsyncpa [#allocation6], 1 }
 0xd26   :  { %709 = vsyncpa [#allocation9], 1 }
 0xd27   :  { %710 = vsyncpa [#allocation12], 1 }
 0xd28   :  { %711 = vsyncpa [#allocation4], 1 }
 0xd29   :  { %712 = vsyncpa [#allocation15], 1 }

</bundles_post_ra>
